<compile_context>
chip_gen: v5e
topology: v5e:2x2
jax: 0.10.0
libtpu: 0.0.40
codegen_flags: <defaults>
</compile_context>

<pallas_src>
import functools
import math

import jax
import jax.numpy as jnp
from jax import lax
from jax.experimental import pallas as pl
from jax.experimental.pallas import tpu as pltpu


# ----------------------------- in-kernel math helpers -----------------------------

def _layer_norm(x, g, b, eps=1e-5):
    u = jnp.mean(x, axis=-1, keepdims=True)
    s = jnp.mean((x - u) ** 2, axis=-1, keepdims=True)
    return (x - u) * lax.rsqrt(s + eps) * g + b


def _gelu(x):
    c = (2.0 / jnp.pi) ** 0.5
    return 0.5 * x * (1.0 + jnp.tanh(c * (x + 0.044715 * x * x * x)))


# ----------------------------- fused GPT-stack kernel -----------------------------

def gpt_stack_kernel(x_ref,
                     ln1g_ref, ln1b_ref,
                     wq_ref, wk_ref, wv_ref,
                     bq_ref, bk_ref, bv_ref,
                     wproj_ref, bproj_ref,
                     ln2g_ref, ln2b_ref,
                     wfc_ref, bfc_ref,
                     wmp_ref, bmp_ref,
                     lnfg_ref, lnfb_ref,
                     o_ref,
                     x_vmem,
                     *, n_head):
    """Grid = (batch_tile, layer).  Activations live in x_vmem across the layer axis.

    NOTE: correctness of the x_vmem carry relies on the layer axis being the innermost,
    non-split ("arbitrary") grid axis.
    """
    layer = pl.program_id(1)
    Bt, T, D = x_vmem.shape
    dh = D // n_head
    M = Bt * T

    # Load this batch tile's embeddings once, at the first layer.
    @pl.when(layer == 0)
    def _():
        x_vmem[...] = x_ref[...]

    x = x_vmem[...]                                            # (Bt, T, D) f32

    # ---------------- attention branch ----------------
    h = _layer_norm(x, ln1g_ref[0, 0], ln1b_ref[0, 0]).astype(jnp.bfloat16)
    h2d = h.reshape(M, D)                                      # batch folded into M

    # Fused full-width projections (1/sqrt(dh) pre-folded into wq/bq on the host).
    q = (jnp.dot(h2d, wq_ref[0], preferred_element_type=jnp.float32)
         + bq_ref[0]).reshape(Bt, T, D)
    k = (jnp.dot(h2d, wk_ref[0], preferred_element_type=jnp.float32)
         + bk_ref[0]).reshape(Bt, T, D)
    v = (jnp.dot(h2d, wv_ref[0], preferred_element_type=jnp.float32)
         + bv_ref[0]).reshape(Bt, T, D)

    # Causal additive mask built in-kernel (no HBM mask DMA).
    row = lax.broadcasted_iota(jnp.int32, (T, T), 0)
    col = lax.broadcasted_iota(jnp.int32, (T, T), 1)
    mask = jnp.where(row >= col, 0.0, -1e9).astype(jnp.float32)[None, :, :]

    # Per-head scores / softmax / PV (head count is static; loop unrolls at trace time).
    head_outs = []
    for hd in range(n_head):
        sl = slice(hd * dh, (hd + 1) * dh)
        qh = q[:, :, sl].astype(jnp.bfloat16)                  # (Bt, T, dh)
        kh = k[:, :, sl].astype(jnp.bfloat16)
        vh = v[:, :, sl].astype(jnp.bfloat16)

        s = jnp.einsum('bqd,bkd->bqk', qh, kh,
                       preferred_element_type=jnp.float32)     # (Bt, T, T)
        s = s + mask
        s = s - jnp.max(s, axis=-1, keepdims=True)
        p = jnp.exp(s)
        p = p * pl.reciprocal(jnp.sum(p, axis=-1, keepdims=True), approx=True)

        head_outs.append(
            jnp.einsum('bqk,bkd->bqd', p.astype(jnp.bfloat16), vh,
                       preferred_element_type=jnp.float32))    # (Bt, T, dh)

    # Merge heads by concatenation -> one fused (M,D)x(D,D) output projection.
    a = jnp.concatenate(head_outs, axis=-1)                    # (Bt, T, D) f32
    a2d = a.reshape(M, D).astype(jnp.bfloat16)
    attn_out = (jnp.dot(a2d, wproj_ref[0], preferred_element_type=jnp.float32)
                + bproj_ref[0]).reshape(Bt, T, D)
    x = x + attn_out

    # ---------------- MLP branch ----------------
    h2 = _layer_norm(x, ln2g_ref[0, 0], ln2b_ref[0, 0]).astype(jnp.bfloat16)
    h2d2 = h2.reshape(M, D)
    fc = _gelu(jnp.dot(h2d2, wfc_ref[0],
                       preferred_element_type=jnp.float32) + bfc_ref[0])
    mp = (jnp.dot(fc.astype(jnp.bfloat16), wmp_ref[0],
                  preferred_element_type=jnp.float32) + bmp_ref[0]).reshape(Bt, T, D)
    x = x + mp

    x_vmem[...] = x

    # Fold ln_f into the last layer and emit bf16.
    @pl.when(layer == pl.num_programs(1) - 1)
    def _():
        o_ref[...] = _layer_norm(x, lnfg_ref[0], lnfb_ref[0]).astype(o_ref.dtype)


# ----------------------------- wrapper -----------------------------

_STACKED_NAMES = ("ln1_g", "ln1_b", "wq", "wk", "wv", "bq", "bk", "bv",
                  "wproj", "bproj", "ln2_g", "ln2_b", "wfc", "bfc", "wmp", "bmp")


def _layer_spec(arr):
    nd = arr.ndim
    return pl.BlockSpec((1,) + arr.shape[1:],
                        lambda bt, l, _nd=nd: (l,) + (0,) * (_nd - 1))


def _full_spec(arr):
    nd = arr.ndim
    return pl.BlockSpec(arr.shape, lambda bt, l, _nd=nd: (0,) * _nd)


def gpt_forward(input_ids, params, n_head, batch_tile=None):
    # Glue: embedding gathers (wte + wpe); dropout = identity (eval mode).
    B, T = input_ids.shape
    D = params["wte"].shape[-1]
    L = params["ln1_g"].shape[0]
    Bt = B if batch_tile is None else batch_tile
    assert B % Bt == 0

    pos = jnp.arange(T, dtype=jnp.int32)
    x = (params["wte"][input_ids] + params["wpe"][pos][None, :, :]).astype(jnp.float32)

    stacked = [params[n] for n in _STACKED_NAMES]

    in_specs = [pl.BlockSpec((Bt, T, D), lambda bt, l: (bt, 0, 0))]   # activations
    in_specs += [_layer_spec(a) for a in stacked]
    in_specs += [_full_spec(params["lnf_g"]), _full_spec(params["lnf_b"])]

    # VMEM budget: double-buffered per-layer weights + activations + headroom,
    # capped below v7x's 64 MiB physical ceiling.
    wbytes = sum(math.prod(a.shape[1:]) * a.dtype.itemsize for a in stacked)
    abytes = Bt * T * D * 4
    est = 2 * wbytes + 8 * abytes + (8 << 20)
    vmem_limit = int(min(max(est, 32 << 20), 64 << 20))

    kernel = functools.partial(gpt_stack_kernel, n_head=n_head)

    return pl.pallas_call(
        kernel,
        out_shape=jax.ShapeDtypeStruct((B, T, D), jnp.bfloat16),
        # Layer axis MUST stay innermost & "arbitrary" — x_vmem carries across it.
        grid=(B // Bt, L),
        in_specs=in_specs,
        out_specs=pl.BlockSpec((Bt, T, D), lambda bt, l: (bt, 0, 0)),
        scratch_shapes=[pltpu.VMEM((Bt, T, D), jnp.float32)],
        compiler_params=pltpu.CompilerParams(
            dimension_semantics=("parallel", "arbitrary"),
            vmem_limit_bytes=vmem_limit),
    )(x, *stacked, params["lnf_g"], params["lnf_b"])


# ----------------------------- deterministic init -----------------------------

def init_params(key, *, vocab_size, n_positions, n_embd, n_head, n_layer):
    D = n_embd
    dh = D // n_head
    std = 0.02
    scale = 1.0 / (dh ** 0.5)          # folded into W_q / b_q
    k = jax.random.split(key, 8)

    def w(kk, shape):
        return std * jax.random.normal(kk, shape, jnp.float32)

    # Fused full-width attention weights: [L, D, D] (head split happens in-kernel by
    # lane slicing of the activations, not by narrowing the weight N dim).
    return {
        "wte": 0.2 * jax.random.normal(k[0], (vocab_size, D), jnp.float32),
        "wpe": 0.1 * jax.random.normal(k[1], (n_positions, D), jnp.float32),
        "ln1_g": jnp.ones((n_layer, 1, D), jnp.float32),
        "ln1_b": jnp.zeros((n_layer, 1, D), jnp.float32),
        "wq": (w(k[2], (n_layer, D, D)) * scale).astype(jnp.bfloat16),
        "wk": w(k[3], (n_layer, D, D)).astype(jnp.bfloat16),
        "wv": w(k[4], (n_layer, D, D)).astype(jnp.bfloat16),
        "bq": jnp.zeros((n_layer, 1, D), jnp.float32),
        "bk": jnp.zeros((n_layer, 1, D), jnp.float32),
        "bv": jnp.zeros((n_layer, 1, D), jnp.float32),
        "wproj": w(k[5], (n_layer, D, D)).astype(jnp.bfloat16),
        "bproj": jnp.zeros((n_layer, 1, D), jnp.float32),
        "ln2_g": jnp.ones((n_layer, 1, D), jnp.float32),
        "ln2_b": jnp.zeros((n_layer, 1, D), jnp.float32),
        "wfc": w(k[6], (n_layer, D, 4 * D)).astype(jnp.bfloat16),
        "bfc": jnp.zeros((n_layer, 1, 4 * D), jnp.float32),
        "wmp": w(k[7], (n_layer, 4 * D, D)).astype(jnp.bfloat16),
        "bmp": jnp.zeros((n_layer, 1, D), jnp.float32),
        "lnf_g": jnp.ones((1, D), jnp.float32),
        "lnf_b": jnp.zeros((1, D), jnp.float32),
    }


# ----------------------------- main -----------------------------

if __name__ == "__main__":
    # small config consistent with the GPT module
    vocab_size, n_positions, n_embd, n_head, n_layer = 64, 16, 32, 4, 2
    batch, seq = 2, 8

    key = jax.random.PRNGKey(0)
    k_param, k_ids = jax.random.split(key)
    params = init_params(k_param, vocab_size=vocab_size, n_positions=n_positions,
                         n_embd=n_embd, n_head=n_head, n_layer=n_layer)
    input_ids = jax.random.randint(k_ids, (batch, seq), 0, vocab_size, dtype=jnp.int32)

    out = gpt_forward(input_ids, params, n_head)
    out = jax.block_until_ready(out)
    assert out.shape == (batch, seq, n_embd)
    assert bool(jnp.all(jnp.isfinite(out.astype(jnp.float32))))
    print("KERNEL_OK")
</pallas_src>

<mosaic_0001>
module attributes {stable_mosaic.version = 11 : i64} {
  func.func @gpt_stack_kernel(%arg0: i32, %arg1: i32, %arg2: memref<2x8x32xf32, #tpu.memory_space<vmem>>, %arg3: memref<1x1x32xf32, #tpu.memory_space<vmem>>, %arg4: memref<1x1x32xf32, #tpu.memory_space<vmem>>, %arg5: memref<1x32x32xbf16, #tpu.memory_space<vmem>>, %arg6: memref<1x32x32xbf16, #tpu.memory_space<vmem>>, %arg7: memref<1x32x32xbf16, #tpu.memory_space<vmem>>, %arg8: memref<1x1x32xf32, #tpu.memory_space<vmem>>, %arg9: memref<1x1x32xf32, #tpu.memory_space<vmem>>, %arg10: memref<1x1x32xf32, #tpu.memory_space<vmem>>, %arg11: memref<1x32x32xbf16, #tpu.memory_space<vmem>>, %arg12: memref<1x1x32xf32, #tpu.memory_space<vmem>>, %arg13: memref<1x1x32xf32, #tpu.memory_space<vmem>>, %arg14: memref<1x1x32xf32, #tpu.memory_space<vmem>>, %arg15: memref<1x32x128xbf16, #tpu.memory_space<vmem>>, %arg16: memref<1x1x128xf32, #tpu.memory_space<vmem>>, %arg17: memref<1x128x32xbf16, #tpu.memory_space<vmem>>, %arg18: memref<1x1x32xf32, #tpu.memory_space<vmem>>, %arg19: memref<1x32xf32, #tpu.memory_space<vmem>>, %arg20: memref<1x32xf32, #tpu.memory_space<vmem>>, %arg21: memref<2x8x32xbf16, #tpu.memory_space<vmem>>, %arg22: memref<2x8x32xf32, #tpu.memory_space<vmem>>) attributes {dimension_semantics = [#tpu.dimension_semantics<parallel>, #tpu.dimension_semantics<arbitrary>], iteration_bounds = array<i64: 1, 2>, scalar_prefetch = 0 : i64, scratch_operands = 1 : i64, tpu.core_type = #tpu.core_type<tc>, window_params = [{transform_indices = @transform_0, window_bounds = array<i64: 2, 8, 32>}, {transform_indices = @transform_1, window_bounds = array<i64: 1, 1, 32>}, {transform_indices = @transform_2, window_bounds = array<i64: 1, 1, 32>}, {transform_indices = @transform_3, window_bounds = array<i64: 1, 32, 32>}, {transform_indices = @transform_4, window_bounds = array<i64: 1, 32, 32>}, {transform_indices = @transform_5, window_bounds = array<i64: 1, 32, 32>}, {transform_indices = @transform_6, window_bounds = array<i64: 1, 1, 32>}, {transform_indices = @transform_7, window_bounds = array<i64: 1, 1, 32>}, {transform_indices = @transform_8, window_bounds = array<i64: 1, 1, 32>}, {transform_indices = @transform_9, window_bounds = array<i64: 1, 32, 32>}, {transform_indices = @transform_10, window_bounds = array<i64: 1, 1, 32>}, {transform_indices = @transform_11, window_bounds = array<i64: 1, 1, 32>}, {transform_indices = @transform_12, window_bounds = array<i64: 1, 1, 32>}, {transform_indices = @transform_13, window_bounds = array<i64: 1, 32, 128>}, {transform_indices = @transform_14, window_bounds = array<i64: 1, 1, 128>}, {transform_indices = @transform_15, window_bounds = array<i64: 1, 128, 32>}, {transform_indices = @transform_16, window_bounds = array<i64: 1, 1, 32>}, {pipeline_mode = #tpu.pipeline_mode<synchronous>, transform_indices = @transform_17, window_bounds = array<i64: 1, 32>}, {pipeline_mode = #tpu.pipeline_mode<synchronous>, transform_indices = @transform_18, window_bounds = array<i64: 1, 32>}, {transform_indices = @transform_19, window_bounds = array<i64: 2, 8, 32>}]} {
    %c0_i32 = arith.constant 0 : i32
    %0 = arith.cmpi eq, %arg1, %c0_i32 : i32
    %1 = arith.extui %0 : i1 to i32
    %c0_i32_0 = arith.constant 0 : i32
    %2 = arith.cmpi ne, %1, %c0_i32_0 : i32
    scf.if %2 {
      %c0_92 = arith.constant 0 : index
      %c0_93 = arith.constant 0 : index
      %c0_94 = arith.constant 0 : index
      %225 = vector.load %arg2[%c0_92, %c0_93, %c0_94] : memref<2x8x32xf32, #tpu.memory_space<vmem>>, vector<2x8x32xf32>
      %c0_95 = arith.constant 0 : index
      %c0_96 = arith.constant 0 : index
      %c0_97 = arith.constant 0 : index
      %226 = vector.load %arg22[%c0_95, %c0_96, %c0_97] : memref<2x8x32xf32, #tpu.memory_space<vmem>>, vector<2x8x32xf32>
      tpu.vector_store %arg22[%c0_95, %c0_96, %c0_97], %225 {strides = array<i32>} : memref<2x8x32xf32, #tpu.memory_space<vmem>>, vector<2x8x32xf32>,
    } else {
    }
    %c0 = arith.constant 0 : index
    %c0_1 = arith.constant 0 : index
    %c0_2 = arith.constant 0 : index
    %3 = vector.load %arg22[%c0, %c0_1, %c0_2] : memref<2x8x32xf32, #tpu.memory_space<vmem>>, vector<2x8x32xf32>
    %c0_3 = arith.constant 0 : index
    %c0_4 = arith.constant 0 : index
    %c0_5 = arith.constant 0 : index
    %4 = vector.load %arg3[%c0_3, %c0_4, %c0_5] : memref<1x1x32xf32, #tpu.memory_space<vmem>>, vector<1x1x32xf32>
    %5 = vector.shape_cast %4 : vector<1x1x32xf32> to vector<32xf32>
    %c0_6 = arith.constant 0 : index
    %c0_7 = arith.constant 0 : index
    %c0_8 = arith.constant 0 : index
    %6 = vector.load %arg4[%c0_6, %c0_7, %c0_8] : memref<1x1x32xf32, #tpu.memory_space<vmem>>, vector<1x1x32xf32>
    %7 = vector.shape_cast %6 : vector<1x1x32xf32> to vector<32xf32>
    %cst = arith.constant dense<0.000000e+00> : vector<2x8xf32>
    %8 = vector.multi_reduction <add>, %3, %cst [2] : vector<2x8x32xf32> to vector<2x8xf32>
    %9 = vector.shape_cast %8 : vector<2x8xf32> to vector<2x8x1xf32>
    %cst_9 = arith.constant 3.200000e+01 : f32
    %10 = vector.broadcast %cst_9 : f32 to vector<2x8x1xf32>
    %11 = arith.divf %9, %10 : vector<2x8x1xf32>
    %12 = vector.broadcast %11 : vector<2x8x1xf32> to vector<2x8x32xf32>
    %13 = arith.subf %3, %12 : vector<2x8x32xf32>
    %14 = arith.mulf %13, %13 : vector<2x8x32xf32>
    %cst_10 = arith.constant dense<0.000000e+00> : vector<2x8xf32>
    %15 = vector.multi_reduction <add>, %14, %cst_10 [2] : vector<2x8x32xf32> to vector<2x8xf32>
    %16 = vector.shape_cast %15 : vector<2x8xf32> to vector<2x8x1xf32>
    %cst_11 = arith.constant 3.200000e+01 : f32
    %17 = vector.broadcast %cst_11 : f32 to vector<2x8x1xf32>
    %18 = arith.divf %16, %17 : vector<2x8x1xf32>
    %19 = vector.broadcast %11 : vector<2x8x1xf32> to vector<2x8x32xf32>
    %20 = arith.subf %3, %19 : vector<2x8x32xf32>
    %cst_12 = arith.constant 9.99999974E-6 : f32
    %21 = vector.broadcast %cst_12 : f32 to vector<2x8x1xf32>
    %22 = arith.addf %18, %21 : vector<2x8x1xf32>
    %23 = math.rsqrt %22 : vector<2x8x1xf32>
    %24 = vector.broadcast %23 : vector<2x8x1xf32> to vector<2x8x32xf32>
    %25 = arith.mulf %20, %24 : vector<2x8x32xf32>
    %26 = vector.shape_cast %5 : vector<32xf32> to vector<1x1x32xf32>
    %27 = vector.broadcast %26 : vector<1x1x32xf32> to vector<2x8x32xf32>
    %28 = arith.mulf %25, %27 : vector<2x8x32xf32>
    %29 = vector.shape_cast %7 : vector<32xf32> to vector<1x1x32xf32>
    %30 = vector.broadcast %29 : vector<1x1x32xf32> to vector<2x8x32xf32>
    %31 = arith.addf %28, %30 : vector<2x8x32xf32>
    %32 = arith.truncf %31 : vector<2x8x32xf32> to vector<2x8x32xbf16>
    %33 = vector.shape_cast %32 : vector<2x8x32xbf16> to vector<16x32xbf16>
    %c0_13 = arith.constant 0 : index
    %c0_14 = arith.constant 0 : index
    %c0_15 = arith.constant 0 : index
    %34 = vector.load %arg5[%c0_13, %c0_14, %c0_15] : memref<1x32x32xbf16, #tpu.memory_space<vmem>>, vector<1x32x32xbf16>
    %35 = vector.shape_cast %34 : vector<1x32x32xbf16> to vector<32x32xbf16>
    %cst_16 = arith.constant dense<0.000000e+00> : vector<16x32xf32>
    %36 = tpu.matmul %33, %35, %cst_16 {dimension_numbers = #tpu.dot_dimension_numbers<[1], [0], [0], [1], [0, 0, 1, 1], [], []>} : vector<16x32xbf16>, vector<32x32xbf16>, vector<16x32xf32> -> vector<16x32xf32>
    %c0_17 = arith.constant 0 : index
    %c0_18 = arith.constant 0 : index
    %c0_19 = arith.constant 0 : index
    %37 = vector.load %arg8[%c0_17, %c0_18, %c0_19] : memref<1x1x32xf32, #tpu.memory_space<vmem>>, vector<1x1x32xf32>
    %38 = vector.shape_cast %37 : vector<1x1x32xf32> to vector<1x32xf32>
    %39 = vector.broadcast %38 : vector<1x32xf32> to vector<16x32xf32>
    %40 = arith.addf %36, %39 : vector<16x32xf32>
    %41 = vector.shape_cast %40 : vector<16x32xf32> to vector<2x8x32xf32>
    %c0_20 = arith.constant 0 : index
    %c0_21 = arith.constant 0 : index
    %c0_22 = arith.constant 0 : index
    %42 = vector.load %arg6[%c0_20, %c0_21, %c0_22] : memref<1x32x32xbf16, #tpu.memory_space<vmem>>, vector<1x32x32xbf16>
    %43 = vector.shape_cast %42 : vector<1x32x32xbf16> to vector<32x32xbf16>
    %cst_23 = arith.constant dense<0.000000e+00> : vector<16x32xf32>
    %44 = tpu.matmul %33, %43, %cst_23 {dimension_numbers = #tpu.dot_dimension_numbers<[1], [0], [0], [1], [0, 0, 1, 1], [], []>} : vector<16x32xbf16>, vector<32x32xbf16>, vector<16x32xf32> -> vector<16x32xf32>
    %c0_24 = arith.constant 0 : index
    %c0_25 = arith.constant 0 : index
    %c0_26 = arith.constant 0 : index
    %45 = vector.load %arg9[%c0_24, %c0_25, %c0_26] : memref<1x1x32xf32, #tpu.memory_space<vmem>>, vector<1x1x32xf32>
    %46 = vector.shape_cast %45 : vector<1x1x32xf32> to vector<1x32xf32>
    %47 = vector.broadcast %46 : vector<1x32xf32> to vector<16x32xf32>
    %48 = arith.addf %44, %47 : vector<16x32xf32>
    %49 = vector.shape_cast %48 : vector<16x32xf32> to vector<2x8x32xf32>
    %c0_27 = arith.constant 0 : index
    %c0_28 = arith.constant 0 : index
    %c0_29 = arith.constant 0 : index
    %50 = vector.load %arg7[%c0_27, %c0_28, %c0_29] : memref<1x32x32xbf16, #tpu.memory_space<vmem>>, vector<1x32x32xbf16>
    %51 = vector.shape_cast %50 : vector<1x32x32xbf16> to vector<32x32xbf16>
    %cst_30 = arith.constant dense<0.000000e+00> : vector<16x32xf32>
    %52 = tpu.matmul %33, %51, %cst_30 {dimension_numbers = #tpu.dot_dimension_numbers<[1], [0], [0], [1], [0, 0, 1, 1], [], []>} : vector<16x32xbf16>, vector<32x32xbf16>, vector<16x32xf32> -> vector<16x32xf32>
    %c0_31 = arith.constant 0 : index
    %c0_32 = arith.constant 0 : index
    %c0_33 = arith.constant 0 : index
    %53 = vector.load %arg10[%c0_31, %c0_32, %c0_33] : memref<1x1x32xf32, #tpu.memory_space<vmem>>, vector<1x1x32xf32>
    %54 = vector.shape_cast %53 : vector<1x1x32xf32> to vector<1x32xf32>
    %55 = vector.broadcast %54 : vector<1x32xf32> to vector<16x32xf32>
    %56 = arith.addf %52, %55 : vector<16x32xf32>
    %57 = vector.shape_cast %56 : vector<16x32xf32> to vector<2x8x32xf32>
    %58 = tpu.iota {dimensions = array<i32: 0>} : vector<8x8xi32>
    %59 = tpu.iota {dimensions = array<i32: 1>} : vector<8x8xi32>
    %60 = arith.cmpi sge, %58, %59 : vector<8x8xi32>
    %cst_34 = arith.constant 0.000000e+00 : f32
    %cst_35 = arith.constant -1.000000e+09 : f32
    %61 = vector.broadcast %cst_34 : f32 to vector<8x8xf32>
    %62 = vector.broadcast %cst_35 : f32 to vector<8x8xf32>
    %63 = arith.select %60, %61, %62 : vector<8x8xi1>, vector<8x8xf32>
    %64 = vector.shape_cast %63 : vector<8x8xf32> to vector<1x8x8xf32>
    %65 = vector.extract_strided_slice %41 {offsets = [0, 0, 0], sizes = [2, 8, 8], strides = [1, 1, 1]} : vector<2x8x32xf32> to vector<2x8x8xf32>
    %66 = arith.truncf %65 : vector<2x8x8xf32> to vector<2x8x8xbf16>
    %67 = vector.extract_strided_slice %49 {offsets = [0, 0, 0], sizes = [2, 8, 8], strides = [1, 1, 1]} : vector<2x8x32xf32> to vector<2x8x8xf32>
    %68 = arith.truncf %67 : vector<2x8x8xf32> to vector<2x8x8xbf16>
    %69 = vector.extract_strided_slice %57 {offsets = [0, 0, 0], sizes = [2, 8, 8], strides = [1, 1, 1]} : vector<2x8x32xf32> to vector<2x8x8xf32>
    %70 = arith.truncf %69 : vector<2x8x8xf32> to vector<2x8x8xbf16>
    "tpu.trace_start"() <{level = 10 : i32, message = "bqd,bkd->bqk"}> : () -> ()
    %cst_36 = arith.constant dense<0.000000e+00> : vector<2x8x8xf32>
    %71 = tpu.matmul %66, %68, %cst_36 {dimension_numbers = #tpu.dot_dimension_numbers<[2], [2], [1], [1], [0, 0, 0, 1, 1, 1], [0], [0]>} : vector<2x8x8xbf16>, vector<2x8x8xbf16>, vector<2x8x8xf32> -> vector<2x8x8xf32>
    "tpu.trace_stop"() : () -> ()
    %72 = vector.broadcast %64 : vector<1x8x8xf32> to vector<2x8x8xf32>
    %73 = arith.addf %71, %72 : vector<2x8x8xf32>
    %cst_37 = arith.constant dense<0xFF800000> : vector<2x8xf32>
    %74 = vector.multi_reduction <maximumf>, %73, %cst_37 [2] : vector<2x8x8xf32> to vector<2x8xf32>
    %75 = vector.shape_cast %74 : vector<2x8xf32> to vector<2x8x1xf32>
    %76 = vector.broadcast %75 : vector<2x8x1xf32> to vector<2x8x8xf32>
    %77 = arith.subf %73, %76 : vector<2x8x8xf32>
    %78 = math.exp %77 : vector<2x8x8xf32>
    %cst_38 = arith.constant dense<0.000000e+00> : vector<2x8xf32>
    %79 = vector.multi_reduction <add>, %78, %cst_38 [2] : vector<2x8x8xf32> to vector<2x8xf32>
    %80 = vector.shape_cast %79 : vector<2x8xf32> to vector<2x8x1xf32>
    %81 = tpu.reciprocal %80 {approx = true} : vector<2x8x1xf32> -> vector<2x8x1xf32>
    %82 = vector.broadcast %81 : vector<2x8x1xf32> to vector<2x8x8xf32>
    %83 = arith.mulf %78, %82 : vector<2x8x8xf32>
    %84 = arith.truncf %83 : vector<2x8x8xf32> to vector<2x8x8xbf16>
    "tpu.trace_start"() <{level = 10 : i32, message = "bqk,bkd->bqd"}> : () -> ()
    %cst_39 = arith.constant dense<0.000000e+00> : vector<2x8x8xf32>
    %85 = tpu.matmul %84, %70, %cst_39 {dimension_numbers = #tpu.dot_dimension_numbers<[2], [1], [1], [2], [0, 0, 0, 1, 1, 2], [0], [0]>} : vector<2x8x8xbf16>, vector<2x8x8xbf16>, vector<2x8x8xf32> -> vector<2x8x8xf32>
    "tpu.trace_stop"() : () -> ()
    %86 = vector.extract_strided_slice %41 {offsets = [0, 0, 8], sizes = [2, 8, 8], strides = [1, 1, 1]} : vector<2x8x32xf32> to vector<2x8x8xf32>
    %87 = arith.truncf %86 : vector<2x8x8xf32> to vector<2x8x8xbf16>
    %88 = vector.extract_strided_slice %49 {offsets = [0, 0, 8], sizes = [2, 8, 8], strides = [1, 1, 1]} : vector<2x8x32xf32> to vector<2x8x8xf32>
    %89 = arith.truncf %88 : vector<2x8x8xf32> to vector<2x8x8xbf16>
    %90 = vector.extract_strided_slice %57 {offsets = [0, 0, 8], sizes = [2, 8, 8], strides = [1, 1, 1]} : vector<2x8x32xf32> to vector<2x8x8xf32>
    %91 = arith.truncf %90 : vector<2x8x8xf32> to vector<2x8x8xbf16>
    "tpu.trace_start"() <{level = 10 : i32, message = "bqd,bkd->bqk"}> : () -> ()
    %cst_40 = arith.constant dense<0.000000e+00> : vector<2x8x8xf32>
    %92 = tpu.matmul %87, %89, %cst_40 {dimension_numbers = #tpu.dot_dimension_numbers<[2], [2], [1], [1], [0, 0, 0, 1, 1, 1], [0], [0]>} : vector<2x8x8xbf16>, vector<2x8x8xbf16>, vector<2x8x8xf32> -> vector<2x8x8xf32>
    "tpu.trace_stop"() : () -> ()
    %93 = vector.broadcast %64 : vector<1x8x8xf32> to vector<2x8x8xf32>
    %94 = arith.addf %92, %93 : vector<2x8x8xf32>
    %cst_41 = arith.constant dense<0xFF800000> : vector<2x8xf32>
    %95 = vector.multi_reduction <maximumf>, %94, %cst_41 [2] : vector<2x8x8xf32> to vector<2x8xf32>
    %96 = vector.shape_cast %95 : vector<2x8xf32> to vector<2x8x1xf32>
    %97 = vector.broadcast %96 : vector<2x8x1xf32> to vector<2x8x8xf32>
    %98 = arith.subf %94, %97 : vector<2x8x8xf32>
    %99 = math.exp %98 : vector<2x8x8xf32>
    %cst_42 = arith.constant dense<0.000000e+00> : vector<2x8xf32>
    %100 = vector.multi_reduction <add>, %99, %cst_42 [2] : vector<2x8x8xf32> to vector<2x8xf32>
    %101 = vector.shape_cast %100 : vector<2x8xf32> to vector<2x8x1xf32>
    %102 = tpu.reciprocal %101 {approx = true} : vector<2x8x1xf32> -> vector<2x8x1xf32>
    %103 = vector.broadcast %102 : vector<2x8x1xf32> to vector<2x8x8xf32>
    %104 = arith.mulf %99, %103 : vector<2x8x8xf32>
    %105 = arith.truncf %104 : vector<2x8x8xf32> to vector<2x8x8xbf16>
    "tpu.trace_start"() <{level = 10 : i32, message = "bqk,bkd->bqd"}> : () -> ()
    %cst_43 = arith.constant dense<0.000000e+00> : vector<2x8x8xf32>
    %106 = tpu.matmul %105, %91, %cst_43 {dimension_numbers = #tpu.dot_dimension_numbers<[2], [1], [1], [2], [0, 0, 0, 1, 1, 2], [0], [0]>} : vector<2x8x8xbf16>, vector<2x8x8xbf16>, vector<2x8x8xf32> -> vector<2x8x8xf32>
    "tpu.trace_stop"() : () -> ()
    %107 = vector.extract_strided_slice %41 {offsets = [0, 0, 16], sizes = [2, 8, 8], strides = [1, 1, 1]} : vector<2x8x32xf32> to vector<2x8x8xf32>
    %108 = arith.truncf %107 : vector<2x8x8xf32> to vector<2x8x8xbf16>
    %109 = vector.extract_strided_slice %49 {offsets = [0, 0, 16], sizes = [2, 8, 8], strides = [1, 1, 1]} : vector<2x8x32xf32> to vector<2x8x8xf32>
    %110 = arith.truncf %109 : vector<2x8x8xf32> to vector<2x8x8xbf16>
    %111 = vector.extract_strided_slice %57 {offsets = [0, 0, 16], sizes = [2, 8, 8], strides = [1, 1, 1]} : vector<2x8x32xf32> to vector<2x8x8xf32>
    %112 = arith.truncf %111 : vector<2x8x8xf32> to vector<2x8x8xbf16>
    "tpu.trace_start"() <{level = 10 : i32, message = "bqd,bkd->bqk"}> : () -> ()
    %cst_44 = arith.constant dense<0.000000e+00> : vector<2x8x8xf32>
    %113 = tpu.matmul %108, %110, %cst_44 {dimension_numbers = #tpu.dot_dimension_numbers<[2], [2], [1], [1], [0, 0, 0, 1, 1, 1], [0], [0]>} : vector<2x8x8xbf16>, vector<2x8x8xbf16>, vector<2x8x8xf32> -> vector<2x8x8xf32>
    "tpu.trace_stop"() : () -> ()
    %114 = vector.broadcast %64 : vector<1x8x8xf32> to vector<2x8x8xf32>
    %115 = arith.addf %113, %114 : vector<2x8x8xf32>
    %cst_45 = arith.constant dense<0xFF800000> : vector<2x8xf32>
    %116 = vector.multi_reduction <maximumf>, %115, %cst_45 [2] : vector<2x8x8xf32> to vector<2x8xf32>
    %117 = vector.shape_cast %116 : vector<2x8xf32> to vector<2x8x1xf32>
    %118 = vector.broadcast %117 : vector<2x8x1xf32> to vector<2x8x8xf32>
    %119 = arith.subf %115, %118 : vector<2x8x8xf32>
    %120 = math.exp %119 : vector<2x8x8xf32>
    %cst_46 = arith.constant dense<0.000000e+00> : vector<2x8xf32>
    %121 = vector.multi_reduction <add>, %120, %cst_46 [2] : vector<2x8x8xf32> to vector<2x8xf32>
    %122 = vector.shape_cast %121 : vector<2x8xf32> to vector<2x8x1xf32>
    %123 = tpu.reciprocal %122 {approx = true} : vector<2x8x1xf32> -> vector<2x8x1xf32>
    %124 = vector.broadcast %123 : vector<2x8x1xf32> to vector<2x8x8xf32>
    %125 = arith.mulf %120, %124 : vector<2x8x8xf32>
    %126 = arith.truncf %125 : vector<2x8x8xf32> to vector<2x8x8xbf16>
    "tpu.trace_start"() <{level = 10 : i32, message = "bqk,bkd->bqd"}> : () -> ()
    %cst_47 = arith.constant dense<0.000000e+00> : vector<2x8x8xf32>
    %127 = tpu.matmul %126, %112, %cst_47 {dimension_numbers = #tpu.dot_dimension_numbers<[2], [1], [1], [2], [0, 0, 0, 1, 1, 2], [0], [0]>} : vector<2x8x8xbf16>, vector<2x8x8xbf16>, vector<2x8x8xf32> -> vector<2x8x8xf32>
    "tpu.trace_stop"() : () -> ()
    %128 = vector.extract_strided_slice %41 {offsets = [0, 0, 24], sizes = [2, 8, 8], strides = [1, 1, 1]} : vector<2x8x32xf32> to vector<2x8x8xf32>
    %129 = arith.truncf %128 : vector<2x8x8xf32> to vector<2x8x8xbf16>
    %130 = vector.extract_strided_slice %49 {offsets = [0, 0, 24], sizes = [2, 8, 8], strides = [1, 1, 1]} : vector<2x8x32xf32> to vector<2x8x8xf32>
    %131 = arith.truncf %130 : vector<2x8x8xf32> to vector<2x8x8xbf16>
    %132 = vector.extract_strided_slice %57 {offsets = [0, 0, 24], sizes = [2, 8, 8], strides = [1, 1, 1]} : vector<2x8x32xf32> to vector<2x8x8xf32>
    %133 = arith.truncf %132 : vector<2x8x8xf32> to vector<2x8x8xbf16>
    "tpu.trace_start"() <{level = 10 : i32, message = "bqd,bkd->bqk"}> : () -> ()
    %cst_48 = arith.constant dense<0.000000e+00> : vector<2x8x8xf32>
    %134 = tpu.matmul %129, %131, %cst_48 {dimension_numbers = #tpu.dot_dimension_numbers<[2], [2], [1], [1], [0, 0, 0, 1, 1, 1], [0], [0]>} : vector<2x8x8xbf16>, vector<2x8x8xbf16>, vector<2x8x8xf32> -> vector<2x8x8xf32>
    "tpu.trace_stop"() : () -> ()
    %135 = vector.broadcast %64 : vector<1x8x8xf32> to vector<2x8x8xf32>
    %136 = arith.addf %134, %135 : vector<2x8x8xf32>
    %cst_49 = arith.constant dense<0xFF800000> : vector<2x8xf32>
    %137 = vector.multi_reduction <maximumf>, %136, %cst_49 [2] : vector<2x8x8xf32> to vector<2x8xf32>
    %138 = vector.shape_cast %137 : vector<2x8xf32> to vector<2x8x1xf32>
    %139 = vector.broadcast %138 : vector<2x8x1xf32> to vector<2x8x8xf32>
    %140 = arith.subf %136, %139 : vector<2x8x8xf32>
    %141 = math.exp %140 : vector<2x8x8xf32>
    %cst_50 = arith.constant dense<0.000000e+00> : vector<2x8xf32>
    %142 = vector.multi_reduction <add>, %141, %cst_50 [2] : vector<2x8x8xf32> to vector<2x8xf32>
    %143 = vector.shape_cast %142 : vector<2x8xf32> to vector<2x8x1xf32>
    %144 = tpu.reciprocal %143 {approx = true} : vector<2x8x1xf32> -> vector<2x8x1xf32>
    %145 = vector.broadcast %144 : vector<2x8x1xf32> to vector<2x8x8xf32>
    %146 = arith.mulf %141, %145 : vector<2x8x8xf32>
    %147 = arith.truncf %146 : vector<2x8x8xf32> to vector<2x8x8xbf16>
    "tpu.trace_start"() <{level = 10 : i32, message = "bqk,bkd->bqd"}> : () -> ()
    %cst_51 = arith.constant dense<0.000000e+00> : vector<2x8x8xf32>
    %148 = tpu.matmul %147, %133, %cst_51 {dimension_numbers = #tpu.dot_dimension_numbers<[2], [1], [1], [2], [0, 0, 0, 1, 1, 2], [0], [0]>} : vector<2x8x8xbf16>, vector<2x8x8xbf16>, vector<2x8x8xf32> -> vector<2x8x8xf32>
    "tpu.trace_stop"() : () -> ()
    %149 = tpu.concatenate %85, %106, %127, %148 in 2 : vector<2x8x8xf32>, vector<2x8x8xf32>, vector<2x8x8xf32>, vector<2x8x8xf32> -> vector<2x8x32xf32>
    %150 = vector.shape_cast %149 : vector<2x8x32xf32> to vector<16x32xf32>
    %151 = arith.truncf %150 : vector<16x32xf32> to vector<16x32xbf16>
    %c0_52 = arith.constant 0 : index
    %c0_53 = arith.constant 0 : index
    %c0_54 = arith.constant 0 : index
    %152 = vector.load %arg11[%c0_52, %c0_53, %c0_54] : memref<1x32x32xbf16, #tpu.memory_space<vmem>>, vector<1x32x32xbf16>
    %153 = vector.shape_cast %152 : vector<1x32x32xbf16> to vector<32x32xbf16>
    %cst_55 = arith.constant dense<0.000000e+00> : vector<16x32xf32>
    %154 = tpu.matmul %151, %153, %cst_55 {dimension_numbers = #tpu.dot_dimension_numbers<[1], [0], [0], [1], [0, 0, 1, 1], [], []>} : vector<16x32xbf16>, vector<32x32xbf16>, vector<16x32xf32> -> vector<16x32xf32>
    %c0_56 = arith.constant 0 : index
    %c0_57 = arith.constant 0 : index
    %c0_58 = arith.constant 0 : index
    %155 = vector.load %arg12[%c0_56, %c0_57, %c0_58] : memref<1x1x32xf32, #tpu.memory_space<vmem>>, vector<1x1x32xf32>
    %156 = vector.shape_cast %155 : vector<1x1x32xf32> to vector<1x32xf32>
    %157 = vector.broadcast %156 : vector<1x32xf32> to vector<16x32xf32>
    %158 = arith.addf %154, %157 : vector<16x32xf32>
    %159 = vector.shape_cast %158 : vector<16x32xf32> to vector<2x8x32xf32>
    %160 = arith.addf %3, %159 : vector<2x8x32xf32>
    %c0_59 = arith.constant 0 : index
    %c0_60 = arith.constant 0 : index
    %c0_61 = arith.constant 0 : index
    %161 = vector.load %arg13[%c0_59, %c0_60, %c0_61] : memref<1x1x32xf32, #tpu.memory_space<vmem>>, vector<1x1x32xf32>
    %162 = vector.shape_cast %161 : vector<1x1x32xf32> to vector<32xf32>
    %c0_62 = arith.constant 0 : index
    %c0_63 = arith.constant 0 : index
    %c0_64 = arith.constant 0 : index
    %163 = vector.load %arg14[%c0_62, %c0_63, %c0_64] : memref<1x1x32xf32, #tpu.memory_space<vmem>>, vector<1x1x32xf32>
    %164 = vector.shape_cast %163 : vector<1x1x32xf32> to vector<32xf32>
    %cst_65 = arith.constant dense<0.000000e+00> : vector<2x8xf32>
    %165 = vector.multi_reduction <add>, %160, %cst_65 [2] : vector<2x8x32xf32> to vector<2x8xf32>
    %166 = vector.shape_cast %165 : vector<2x8xf32> to vector<2x8x1xf32>
    %cst_66 = arith.constant 3.200000e+01 : f32
    %167 = vector.broadcast %cst_66 : f32 to vector<2x8x1xf32>
    %168 = arith.divf %166, %167 : vector<2x8x1xf32>
    %169 = vector.broadcast %168 : vector<2x8x1xf32> to vector<2x8x32xf32>
    %170 = arith.subf %160, %169 : vector<2x8x32xf32>
    %171 = arith.mulf %170, %170 : vector<2x8x32xf32>
    %cst_67 = arith.constant dense<0.000000e+00> : vector<2x8xf32>
    %172 = vector.multi_reduction <add>, %171, %cst_67 [2] : vector<2x8x32xf32> to vector<2x8xf32>
    %173 = vector.shape_cast %172 : vector<2x8xf32> to vector<2x8x1xf32>
    %cst_68 = arith.constant 3.200000e+01 : f32
    %174 = vector.broadcast %cst_68 : f32 to vector<2x8x1xf32>
    %175 = arith.divf %173, %174 : vector<2x8x1xf32>
    %176 = vector.broadcast %168 : vector<2x8x1xf32> to vector<2x8x32xf32>
    %177 = arith.subf %160, %176 : vector<2x8x32xf32>
    %cst_69 = arith.constant 9.99999974E-6 : f32
    %178 = vector.broadcast %cst_69 : f32 to vector<2x8x1xf32>
    %179 = arith.addf %175, %178 : vector<2x8x1xf32>
    %180 = math.rsqrt %179 : vector<2x8x1xf32>
    %181 = vector.broadcast %180 : vector<2x8x1xf32> to vector<2x8x32xf32>
    %182 = arith.mulf %177, %181 : vector<2x8x32xf32>
    %183 = vector.shape_cast %162 : vector<32xf32> to vector<1x1x32xf32>
    %184 = vector.broadcast %183 : vector<1x1x32xf32> to vector<2x8x32xf32>
    %185 = arith.mulf %182, %184 : vector<2x8x32xf32>
    %186 = vector.shape_cast %164 : vector<32xf32> to vector<1x1x32xf32>
    %187 = vector.broadcast %186 : vector<1x1x32xf32> to vector<2x8x32xf32>
    %188 = arith.addf %185, %187 : vector<2x8x32xf32>
    %189 = arith.truncf %188 : vector<2x8x32xf32> to vector<2x8x32xbf16>
    %190 = vector.shape_cast %189 : vector<2x8x32xbf16> to vector<16x32xbf16>
    %c0_70 = arith.constant 0 : index
    %c0_71 = arith.constant 0 : index
    %c0_72 = arith.constant 0 : index
    %191 = vector.load %arg15[%c0_70, %c0_71, %c0_72] : memref<1x32x128xbf16, #tpu.memory_space<vmem>>, vector<1x32x128xbf16>
    %192 = vector.shape_cast %191 : vector<1x32x128xbf16> to vector<32x128xbf16>
    %cst_73 = arith.constant dense<0.000000e+00> : vector<16x128xf32>
    %193 = tpu.matmul %190, %192, %cst_73 {dimension_numbers = #tpu.dot_dimension_numbers<[1], [0], [0], [1], [0, 0, 1, 1], [], []>} : vector<16x32xbf16>, vector<32x128xbf16>, vector<16x128xf32> -> vector<16x128xf32>
    %c0_74 = arith.constant 0 : index
    %c0_75 = arith.constant 0 : index
    %c0_76 = arith.constant 0 : index
    %194 = vector.load %arg16[%c0_74, %c0_75, %c0_76] : memref<1x1x128xf32, #tpu.memory_space<vmem>>, vector<1x1x128xf32>
    %195 = vector.shape_cast %194 : vector<1x1x128xf32> to vector<1x128xf32>
    %196 = vector.broadcast %195 : vector<1x128xf32> to vector<16x128xf32>
    %197 = arith.addf %193, %196 : vector<16x128xf32>
    %cst_77 = arith.constant 5.000000e-01 : f32
    %198 = vector.broadcast %cst_77 : f32 to vector<16x128xf32>
    %199 = arith.mulf %198, %197 : vector<16x128xf32>
    %cst_78 = arith.constant 4.471500e-02 : f32
    %200 = vector.broadcast %cst_78 : f32 to vector<16x128xf32>
    %201 = arith.mulf %200, %197 : vector<16x128xf32>
    %202 = arith.mulf %201, %197 : vector<16x128xf32>
    %203 = arith.mulf %202, %197 : vector<16x128xf32>
    %204 = arith.addf %197, %203 : vector<16x128xf32>
    %cst_79 = arith.constant 0.797884583 : f32
    %205 = vector.broadcast %cst_79 : f32 to vector<16x128xf32>
    %206 = arith.mulf %205, %204 : vector<16x128xf32>
    %207 = math.tanh %206 : vector<16x128xf32>
    %cst_80 = arith.constant 1.000000e+00 : f32
    %208 = vector.broadcast %cst_80 : f32 to vector<16x128xf32>
    %209 = arith.addf %208, %207 : vector<16x128xf32>
    %210 = arith.mulf %199, %209 : vector<16x128xf32>
    %211 = arith.truncf %210 : vector<16x128xf32> to vector<16x128xbf16>
    %c0_81 = arith.constant 0 : index
    %c0_82 = arith.constant 0 : index
    %c0_83 = arith.constant 0 : index
    %212 = vector.load %arg17[%c0_81, %c0_82, %c0_83] : memref<1x128x32xbf16, #tpu.memory_space<vmem>>, vector<1x128x32xbf16>
    %213 = vector.shape_cast %212 : vector<1x128x32xbf16> to vector<128x32xbf16>
    %cst_84 = arith.constant dense<0.000000e+00> : vector<16x32xf32>
    %214 = tpu.matmul %211, %213, %cst_84 {dimension_numbers = #tpu.dot_dimension_numbers<[1], [0], [0], [1], [0, 0, 1, 1], [], []>} : vector<16x128xbf16>, vector<128x32xbf16>, vector<16x32xf32> -> vector<16x32xf32>
    %c0_85 = arith.constant 0 : index
    %c0_86 = arith.constant 0 : index
    %c0_87 = arith.constant 0 : index
    %215 = vector.load %arg18[%c0_85, %c0_86, %c0_87] : memref<1x1x32xf32, #tpu.memory_space<vmem>>, vector<1x1x32xf32>
    %216 = vector.shape_cast %215 : vector<1x1x32xf32> to vector<1x32xf32>
    %217 = vector.broadcast %216 : vector<1x32xf32> to vector<16x32xf32>
    %218 = arith.addf %214, %217 : vector<16x32xf32>
    %219 = vector.shape_cast %218 : vector<16x32xf32> to vector<2x8x32xf32>
    %220 = arith.addf %160, %219 : vector<2x8x32xf32>
    %c0_88 = arith.constant 0 : index
    %c0_89 = arith.constant 0 : index
    %c0_90 = arith.constant 0 : index
    %221 = vector.load %arg22[%c0_88, %c0_89, %c0_90] : memref<2x8x32xf32, #tpu.memory_space<vmem>>, vector<2x8x32xf32>
    tpu.vector_store %arg22[%c0_88, %c0_89, %c0_90], %220 {strides = array<i32>} : memref<2x8x32xf32, #tpu.memory_space<vmem>>, vector<2x8x32xf32>,
    %c1_i32 = arith.constant 1 : i32
    %222 = arith.cmpi eq, %arg1, %c1_i32 : i32
    %223 = arith.extui %222 : i1 to i32
    %c0_i32_91 = arith.constant 0 : i32
    %224 = arith.cmpi ne, %223, %c0_i32_91 : i32
    scf.if %224 {
      %c0_92 = arith.constant 0 : index
      %c0_93 = arith.constant 0 : index
      %225 = vector.load %arg19[%c0_92, %c0_93] : memref<1x32xf32, #tpu.memory_space<vmem>>, vector<1x32xf32>
      %226 = vector.shape_cast %225 : vector<1x32xf32> to vector<32xf32>
      %c0_94 = arith.constant 0 : index
      %c0_95 = arith.constant 0 : index
      %227 = vector.load %arg20[%c0_94, %c0_95] : memref<1x32xf32, #tpu.memory_space<vmem>>, vector<1x32xf32>
      %228 = vector.shape_cast %227 : vector<1x32xf32> to vector<32xf32>
      %cst_96 = arith.constant dense<0.000000e+00> : vector<2x8xf32>
      %229 = vector.multi_reduction <add>, %220, %cst_96 [2] : vector<2x8x32xf32> to vector<2x8xf32>
      %230 = vector.shape_cast %229 : vector<2x8xf32> to vector<2x8x1xf32>
      %cst_97 = arith.constant 3.200000e+01 : f32
      %231 = vector.broadcast %cst_97 : f32 to vector<2x8x1xf32>
      %232 = arith.divf %230, %231 : vector<2x8x1xf32>
      %233 = vector.broadcast %232 : vector<2x8x1xf32> to vector<2x8x32xf32>
      %234 = arith.subf %220, %233 : vector<2x8x32xf32>
      %235 = arith.mulf %234, %234 : vector<2x8x32xf32>
      %cst_98 = arith.constant dense<0.000000e+00> : vector<2x8xf32>
      %236 = vector.multi_reduction <add>, %235, %cst_98 [2] : vector<2x8x32xf32> to vector<2x8xf32>
      %237 = vector.shape_cast %236 : vector<2x8xf32> to vector<2x8x1xf32>
      %cst_99 = arith.constant 3.200000e+01 : f32
      %238 = vector.broadcast %cst_99 : f32 to vector<2x8x1xf32>
      %239 = arith.divf %237, %238 : vector<2x8x1xf32>
      %240 = vector.broadcast %232 : vector<2x8x1xf32> to vector<2x8x32xf32>
      %241 = arith.subf %220, %240 : vector<2x8x32xf32>
      %cst_100 = arith.constant 9.99999974E-6 : f32
      %242 = vector.broadcast %cst_100 : f32 to vector<2x8x1xf32>
      %243 = arith.addf %239, %242 : vector<2x8x1xf32>
      %244 = math.rsqrt %243 : vector<2x8x1xf32>
      %245 = vector.broadcast %244 : vector<2x8x1xf32> to vector<2x8x32xf32>
      %246 = arith.mulf %241, %245 : vector<2x8x32xf32>
      %247 = vector.shape_cast %226 : vector<32xf32> to vector<1x1x32xf32>
      %248 = vector.broadcast %247 : vector<1x1x32xf32> to vector<2x8x32xf32>
      %249 = arith.mulf %246, %248 : vector<2x8x32xf32>
      %250 = vector.shape_cast %228 : vector<32xf32> to vector<1x1x32xf32>
      %251 = vector.broadcast %250 : vector<1x1x32xf32> to vector<2x8x32xf32>
      %252 = arith.addf %249, %251 : vector<2x8x32xf32>
      %253 = arith.truncf %252 : vector<2x8x32xf32> to vector<2x8x32xbf16>
      %c0_101 = arith.constant 0 : index
      %c0_102 = arith.constant 0 : index
      %c0_103 = arith.constant 0 : index
      %254 = vector.load %arg21[%c0_101, %c0_102, %c0_103] : memref<2x8x32xbf16, #tpu.memory_space<vmem>>, vector<2x8x32xbf16>
      tpu.vector_store %arg21[%c0_101, %c0_102, %c0_103], %253 {strides = array<i32>} : memref<2x8x32xbf16, #tpu.memory_space<vmem>>, vector<2x8x32xbf16>,
    } else {
    }
    return
  }
  func.func @transform_0(%arg0: i32, %arg1: i32) -> (i32, i32, i32) {
    %c0_i32 = arith.constant 0 : i32
    %c0_i32_0 = arith.constant 0 : i32
    %c0_i32_1 = arith.constant 0 : i32
    return %arg0, %c0_i32, %c0_i32_0 : i32, i32, i32
  }
  func.func @transform_1(%arg0: i32, %arg1: i32) -> (i32, i32, i32) {
    %c0_i32 = arith.constant 0 : i32
    %c0_i32_0 = arith.constant 0 : i32
    %c0_i32_1 = arith.constant 0 : i32
    return %arg1, %c0_i32, %c0_i32_0 : i32, i32, i32
  }
  func.func @transform_2(%arg0: i32, %arg1: i32) -> (i32, i32, i32) {
    %c0_i32 = arith.constant 0 : i32
    %c0_i32_0 = arith.constant 0 : i32
    %c0_i32_1 = arith.constant 0 : i32
    return %arg1, %c0_i32, %c0_i32_0 : i32, i32, i32
  }
  func.func @transform_3(%arg0: i32, %arg1: i32) -> (i32, i32, i32) {
    %c0_i32 = arith.constant 0 : i32
    %c0_i32_0 = arith.constant 0 : i32
    %c0_i32_1 = arith.constant 0 : i32
    return %arg1, %c0_i32, %c0_i32_0 : i32, i32, i32
  }
  func.func @transform_4(%arg0: i32, %arg1: i32) -> (i32, i32, i32) {
    %c0_i32 = arith.constant 0 : i32
    %c0_i32_0 = arith.constant 0 : i32
    %c0_i32_1 = arith.constant 0 : i32
    return %arg1, %c0_i32, %c0_i32_0 : i32, i32, i32
  }
  func.func @transform_5(%arg0: i32, %arg1: i32) -> (i32, i32, i32) {
    %c0_i32 = arith.constant 0 : i32
    %c0_i32_0 = arith.constant 0 : i32
    %c0_i32_1 = arith.constant 0 : i32
    return %arg1, %c0_i32, %c0_i32_0 : i32, i32, i32
  }
  func.func @transform_6(%arg0: i32, %arg1: i32) -> (i32, i32, i32) {
    %c0_i32 = arith.constant 0 : i32
    %c0_i32_0 = arith.constant 0 : i32
    %c0_i32_1 = arith.constant 0 : i32
    return %arg1, %c0_i32, %c0_i32_0 : i32, i32, i32
  }
  func.func @transform_7(%arg0: i32, %arg1: i32) -> (i32, i32, i32) {
    %c0_i32 = arith.constant 0 : i32
    %c0_i32_0 = arith.constant 0 : i32
    %c0_i32_1 = arith.constant 0 : i32
    return %arg1, %c0_i32, %c0_i32_0 : i32, i32, i32
  }
  func.func @transform_8(%arg0: i32, %arg1: i32) -> (i32, i32, i32) {
    %c0_i32 = arith.constant 0 : i32
    %c0_i32_0 = arith.constant 0 : i32
    %c0_i32_1 = arith.constant 0 : i32
    return %arg1, %c0_i32, %c0_i32_0 : i32, i32, i32
  }
  func.func @transform_9(%arg0: i32, %arg1: i32) -> (i32, i32, i32) {
    %c0_i32 = arith.constant 0 : i32
    %c0_i32_0 = arith.constant 0 : i32
    %c0_i32_1 = arith.constant 0 : i32
    return %arg1, %c0_i32, %c0_i32_0 : i32, i32, i32
  }
  func.func @transform_10(%arg0: i32, %arg1: i32) -> (i32, i32, i32) {
    %c0_i32 = arith.constant 0 : i32
    %c0_i32_0 = arith.constant 0 : i32
    %c0_i32_1 = arith.constant 0 : i32
    return %arg1, %c0_i32, %c0_i32_0 : i32, i32, i32
  }
  func.func @transform_11(%arg0: i32, %arg1: i32) -> (i32, i32, i32) {
    %c0_i32 = arith.constant 0 : i32
    %c0_i32_0 = arith.constant 0 : i32
    %c0_i32_1 = arith.constant 0 : i32
    return %arg1, %c0_i32, %c0_i32_0 : i32, i32, i32
  }
  func.func @transform_12(%arg0: i32, %arg1: i32) -> (i32, i32, i32) {
    %c0_i32 = arith.constant 0 : i32
    %c0_i32_0 = arith.constant 0 : i32
    %c0_i32_1 = arith.constant 0 : i32
    return %arg1, %c0_i32, %c0_i32_0 : i32, i32, i32
  }
  func.func @transform_13(%arg0: i32, %arg1: i32) -> (i32, i32, i32) {
    %c0_i32 = arith.constant 0 : i32
    %c0_i32_0 = arith.constant 0 : i32
    %c0_i32_1 = arith.constant 0 : i32
    return %arg1, %c0_i32, %c0_i32_0 : i32, i32, i32
  }
  func.func @transform_14(%arg0: i32, %arg1: i32) -> (i32, i32, i32) {
    %c0_i32 = arith.constant 0 : i32
    %c0_i32_0 = arith.constant 0 : i32
    %c0_i32_1 = arith.constant 0 : i32
    return %arg1, %c0_i32, %c0_i32_0 : i32, i32, i32
  }
  func.func @transform_15(%arg0: i32, %arg1: i32) -> (i32, i32, i32) {
    %c0_i32 = arith.constant 0 : i32
    %c0_i32_0 = arith.constant 0 : i32
    %c0_i32_1 = arith.constant 0 : i32
    return %arg1, %c0_i32, %c0_i32_0 : i32, i32, i32
  }
  func.func @transform_16(%arg0: i32, %arg1: i32) -> (i32, i32, i32) {
    %c0_i32 = arith.constant 0 : i32
    %c0_i32_0 = arith.constant 0 : i32
    %c0_i32_1 = arith.constant 0 : i32
    return %arg1, %c0_i32, %c0_i32_0 : i32, i32, i32
  }
  func.func @transform_17(%arg0: i32, %arg1: i32) -> (i32, i32) {
    %c0_i32 = arith.constant 0 : i32
    %c0_i32_0 = arith.constant 0 : i32
    %c0_i32_1 = arith.constant 0 : i32
    return %c0_i32, %c0_i32_0 : i32, i32
  }
  func.func @transform_18(%arg0: i32, %arg1: i32) -> (i32, i32) {
    %c0_i32 = arith.constant 0 : i32
    %c0_i32_0 = arith.constant 0 : i32
    %c0_i32_1 = arith.constant 0 : i32
    return %c0_i32, %c0_i32_0 : i32, i32
  }
  func.func @transform_19(%arg0: i32, %arg1: i32) -> (i32, i32, i32) {
    %c0_i32 = arith.constant 0 : i32
    %c0_i32_0 = arith.constant 0 : i32
    %c0_i32_1 = arith.constant 0 : i32
    return %arg0, %c0_i32, %c0_i32_0 : i32, i32, i32
  }
}

</mosaic_0001>

<bundles_post_ra>
// kernel: tpu_custom_call.1
= control target key start
LH: loop header
LB: loop body
LE: loop exit
PB: predicated region body
PF: predicated region fallthrough
CT: control target
= control target key end

     0   :  { %s3265_s0 = inlined_call_operand.hbm [shape: f32[2,8,32], index: 0, kind: input, shape index: {}]   ;;  %s3266_s1 = inlined_call_operand.hbm [shape: f32[2,1,32], index: 1, kind: input, shape index: {}]   ;;  %s3267_s2 = inlined_call_operand.hbm [shape: f32[2,1,32], index: 2, kind: input, shape index: {}]   ;;  %s3268_s3 = inlined_call_operand.vmem [shape: bf16[2,32,32], index: 3, kind: input, shape index: {}]   ;;  %s3269_s4 = inlined_call_operand.vmem [shape: bf16[2,32,32], index: 4, kind: input, shape index: {}]   ;;  %s3270_s5 = inlined_call_operand.vmem [shape: bf16[2,32,32], index: 5, kind: input, shape index: {}]   ;;  %s3271_s6 = inlined_call_operand.vmem [shape: f32[2,1,32], index: 6, kind: input, shape index: {}]   ;;  %s3272_s7 = inlined_call_operand.vmem [shape: f32[2,1,32], index: 7, kind: input, shape index: {}]   ;;  %s3273_s8 = inlined_call_operand.vmem [shape: f32[2,1,32], index: 8, kind: input, shape index: {}]   ;;  %s3274_s9 = inlined_call_operand.vmem [shape: bf16[2,32,32], index: 9, kind: input, shape index: {}]   ;;  %s3275_s10 = inlined_call_operand.vmem [shape: f32[2,1,32], index: 10, kind: input, shape index: {}]   ;;  %s3276_s11 = inlined_call_operand.hbm [shape: f32[2,1,32], index: 11, kind: input, shape index: {}]   ;;  %s3277_s12 = inlined_call_operand.vmem [shape: f32[2,1,32], index: 12, kind: input, shape index: {}]   ;;  %s3278_s13 = inlined_call_operand.vmem [shape: bf16[2,32,128], index: 13, kind: input, shape index: {}]   ;;  %s3279_s14 = inlined_call_operand.vmem [shape: f32[2,1,128], index: 14, kind: input, shape index: {}]   ;;  %s3280_s15 = inlined_call_operand.vmem [shape: bf16[2,128,32], index: 15, kind: input, shape index: {}]   ;;  %s3281_s16 = inlined_call_operand.vmem [shape: f32[2,1,32], index: 16, kind: input, shape index: {}]   ;;  %s3282_s17 = inlined_call_operand.vmem [shape: f32[1,32], index: 17, kind: input, shape index: {}]   ;;  %s3283_s18 = inlined_call_operand.vmem [shape: f32[1,32], index: 18, kind: input, shape index: {}]   ;;  %s3284_s19 = inlined_call_operand.hbm [shape: bf16[2,8,32], index: 19, kind: output, shape index: {}]  }
   0x1   :  { %3292 = sst [smem:[#allocation24_spill]] %s3265_s0 }
   0x2   :  { %3293 = sst [smem:[#allocation25_spill]] %s3266_s1 }
   0x3   :  { %3294 = sst [smem:[#allocation26_spill]] %s3267_s2 }
   0x4   :  { %3295 = sst [smem:[#allocation27_spill]] %s3268_s3 }
   0x5   :  { %3296 = sst [smem:[#allocation28_spill]] %s3269_s4 }
   0x6   :  { %3297 = sst [smem:[#allocation29_spill]] %s3270_s5 }
   0x7   :  { %3298 = sst [smem:[#allocation30_spill]] %s3274_s9 }
   0x8   :  { %3299 = sst [smem:[#allocation31_spill]] %s3275_s10 }
   0x9   :  { %3300 = sst [smem:[#allocation32_spill]] %s3276_s11 }
   0xa   :  { %3301 = sst [smem:[#allocation33_spill]] %s3277_s12 }
   0xb   :  { %3302 = sst [smem:[#allocation34_spill]] %s3278_s13 }
   0xc   :  { %3303 = sst [smem:[#allocation35_spill]] %s3279_s14 }
   0xd   :  { %3304 = sst [smem:[#allocation36_spill]] %s3280_s15 }
   0xe   :  { %3305 = sst [smem:[#allocation37_spill]] %s3281_s16 }
   0xf   :  { %3306 = sst [smem:[#allocation38_spill]] %s3282_s17 }
  0x10   :  { %3307 = sst [smem:[#allocation39_spill]] %s3283_s18 }
  0x11   :  { %3308 = sst [smem:[#allocation40_spill]] %s3284_s19 }
  0x12   :  { %24 = vsyncpa [#allocation4], 0 }
  0x13   :  { %25 = vsyncpa [#allocation7], 0 }
  0x14   :  { %27 = vsyncpa [#allocation7 + $0x1], 0 }
  0x15   :  { %28 = vsyncpa [#allocation10], 0 }
  0x16   :  { %30 = vsyncpa [#allocation10 + $0x1], 0 }
  0x17   :  { %31 = vsyncpa [#allocation5], 0  ;;  %s2825_s0 = smov 0   ;;  %s2827_s30 = smov 0  }
  0x18   :  { %s2829_s20 = smov 0   ;;  %s2831_s21 = smov 0  }
  0x19   :  { %s2833_s1 = smov 0   ;;  %s2835_s22 = smov 0  }
  0x1a LB: > { %3309 = sst [smem:[#allocation16_spill]] %s2693_s30  ;;  %s46_s2 = sadd.s32 1, %s2705_s1  ;;  %s2709_s22 = sphi %s2835_s22, %s37_s22   ;;  %s2705_s1 = sphi %s2833_s1, %s3356_s1   ;;  %s2701_s21 = sphi %s2831_s21, %s3355_s21   ;;  %s2697_s20 = sphi %s2829_s20, %s3354_s20   ;;  %s2693_s30 = sphi %s2827_s30, %s3353_s30   ;;  %s2689_s0 = sphi %s2825_s0, %s3352_s0  }
  0x1b   : > { %3310 = sst [smem:[#allocation17_spill]] %s2697_s20  ;;  %s82_s23 = sadd.s32 1, %s2697_s20 }
  0x1c   : > { %3311 = sst [smem:[#allocation18_spill]] %s2705_s1  ;;  %p47_p0 = scmp.ge.s32.totalorder %s46_s2, 2 }
  0x1d   : > { %3312 = sst [smem:[#allocation19_spill]] %s2709_s22  ;;  %p89_p1 = scmp.ne.s32.totalorder %s2697_s20, %s2693_s30 }
  0x1e   : > { %p90_p2 = scmp.eq.s32.totalorder %s2709_s22, 0  ;;  %p95_p3 = scmp.ne.s32.totalorder %s2693_s30, %s2689_s0 }
  0x1f   : > { %s3358_s2 = smov (%p47_p0, %s46_s2), 0  ;;  %p2356_p5 = scmp.lt.s32.totalorder %s2709_s22, 2 }
  0x20   : > { %3313 = sst [smem:[#allocation20_spill]] %s3358_s2  ;;  %p2864_p4 = por %p90_p2, %p89_p1 }
  0x21   : > { %s79_s25 = ssub.s32 %s2705_s1, %s3358_s2  ;;  %s600_s3 = sand.u32 1, %s2709_s22  }
  0x22   : > { %p80_p6 = scmp.eq.s32.totalorder %s79_s25, 0  ;;  %s2873_s26 = sand.u32 1, %s2697_s20  }
  0x23   : > { %s3316_s19 = sld [smem:[#allocation25_spill]]  ;;  %s603_s15 = scalar_lea.vmem [#allocation6], %s2873_s26 }
  0x24   : > { %s2876_s27 = scalar_select %p80_p6, %s2697_s20, %s82_s23  }
  0x25   : > { %s610_s16 = sshll.u32 %s603_s15, 4  ;;  %p2885_p7 = pnand %p2356_p5, %p2864_p4  ;;  %s611_s16 = int_to_ptr.vmem [resolvable:$true] %s610_s16 }
  0x26   : > { %3315 = sst [smem:[#allocation21_spill]] %s2876_s27  ;;  %s2890_s2 = sadd.s32 4294967295, %s2709_s22  }
  0x27   : > { %3318 = sst [smem:[#allocation22_spill]] %s2890_s2  ;;  %p96_p8 = scmp.eq.s32.totalorder %s2890_s2, 0 }
  0x28   : > { %p2187_p10 = scmp.ge.s32.totalorder %s2709_s22, 1  ;;  %p564_p11 = scmp.lt.s32.totalorder %s2709_s22, 3 }
  0x29   : > { %s606_s18 = scalar_lea.hbm %s3316_s19, %s2705_s1  ;;  %s601_s19 = scalar_lea.sflag [#allocation7], %s600_s3 }
  0x2a   : > { %s608_s17 = sshll.u32 %s606_s18, 4  ;;  %p2900_p9 = por %p96_p8, %p95_p3  ;;  %s609_s17 = int_to_ptr.hbm [resolvable:$true] %s608_s17 }
  0x2b   : > { %2348 = dma.hbm_to_vmem [thread:$0]  (!%p2885_p7), %s609_s17, 16, %s611_s16, %s601_s19  }
  0x2c   : > { %s3320_s24 = sld [smem:[#allocation24_spill]]  ;;  %p2909_p12 = pnand %p2187_p10, %p564_p11 }
  0x2d   : > { %s2711_s16 = smov [#allocation3]   ;;  %s3322_s18 = sld [smem:[#allocation26_spill]] }
  0x2e   : > { %s580_s17 = sshll.u32 %s2711_s16, 4  ;;  %p2341_p13 = pneg %p2909_p12  ;;  %s581_s17 = int_to_ptr.vmem [resolvable:$true] %s580_s17 }
  0x2f   : > { %s620_s27 = scalar_lea.vmem [#allocation8], %s2873_s26  ;;  %s2712_s22 = smov 128  }
  0x30   : > { %p2342_p0 = pnand %p2341_p13, %p96_p8  ;;  %s627_s20 = sshll.u32 %s620_s27, 4  ;;  %s628_s20 = int_to_ptr.vmem [resolvable:$true] %s627_s20 }
  0x31   : > { %s2713_s14 = smov 8   ;;  %s3323_s11 = sld [smem:[#allocation32_spill]] }
  0x32   : > { %s578_s28 = sshll.u32 %s3320_s24, 4  ;;  %s693_s9 = scalar_lea.vmem [#allocation9], %s2873_s26  ;;  %s579_s28 = int_to_ptr.hbm [resolvable:$true] %s578_s28 }
  0x33   : > { %s623_s23 = scalar_lea.hbm %s3322_s18, %s2705_s1  ;;  %s700_s0 = sshll.u32 %s693_s9, 4  ;;  %s701_s0 = int_to_ptr.vmem [resolvable:$true] %s700_s0 }
  0x34   : > { %s625_s24 = sshll.u32 %s623_s23, 4  ;;  %s691_s3 = scalar_lea.sflag [#allocation10], %s2873_s26  ;;  %s626_s24 = int_to_ptr.hbm [resolvable:$true] %s625_s24 }
  0x35   : > { %2344 = dma.hbm_to_vmem [thread:$0]  (!%p2342_p0), %s579_s28, 256, %s581_s17, [#allocation4], %s2712_s22, %s2712_s22, %s2713_s14  }
  0x36   : > { %2351 = dma.hbm_to_vmem [thread:$0]  (!%p2885_p7), %s626_s24, 16, %s628_s20, %s601_s19  }
  0x37   : > { %s696_s12 = scalar_lea.hbm %s3323_s11, %s2705_s1  ;;  %743 = sbr.rel (%p2909_p12) target bundleno = 2307 (0x903), region = 96 }
  0x38   : > { %s698_s10 = sshll.u32 %s696_s12, 4  ;;  %s699_s10 = int_to_ptr.hbm [resolvable:$true] %s698_s10 }
  0x39   : > { %2354 = dma.hbm_to_vmem [thread:$0]  (!%p2885_p7), %s699_s10, 16, %s701_s0, %s691_s3  }
  0x3c   : > { %2672 = dma.done.wait (%p96_p8), [#allocation4], 256  }
  0x3d   : > { %2674 = vsyncadd (%p96_p8), [#allocation4], 4294967040  ;;  %s750_s12 = sand.u32 1, %s2890_s2   ;;  %s2940_s13 = sand.u32 1, %s2693_s30  }
  0x3e   : > { %s751_s9 = scalar_lea.sflag [#allocation7], %s750_s12 }
  0x3f   : > { %2676 = dma.done.wait (%p2900_p9), %s751_s9, 32  }
  0x40   : > { %2678 = vsyncadd (%p2900_p9), %s751_s9, 4294967264  ;;  %s769_s20 = scalar_lea.sflag [#allocation10], %s2940_s13 }
  0x41   : > { %2680 = dma.done.wait (%p2900_p9), %s769_s20, 16  }
  0x42   : > { %2682 = vsyncadd (%p2900_p9), %s769_s20, 4294967280  ;;  %p881_p1 = scmp.lt.s32.totalorder %s2701_s21, 1  ;;  %s3324_s17 = sld [smem:[#allocation27_spill]] }
  0x43   : > { %s3325_s4 = sld [smem:[#allocation28_spill]]  ;;  %p2204_p2 = scmp.ne.s32.totalorder %s2701_s21, 0 }
  0x44   : > { %s2956_s26 = scalar_select %p881_p1, %s2701_s21, 1 }
  0x45   : > { %s3326_s5 = sld [smem:[#allocation29_spill]] }
  0x46   : > { %s2303_s27 = sshll.u32 %s2956_s26, 4  ;;  %s3327_s15 = sld [smem:[#allocation30_spill]] }
  0x47   : > { %s3331_s20 = sld [smem:[#allocation34_spill]]  ;;  %s2308_s29 = sshll.u32 %s2956_s26, 6 }
  0x48   : > { %s2966_s18 = scalar_lea.vmem %s3324_s17, %s2303_s27  ;;  %s3332_s28 = sld [smem:[#allocation35_spill]] }
  0x49   : > { %s2971_s16 = scalar_lea.vmem %s3325_s4, %s2303_s27  ;;  %s3333_s2 = sld [smem:[#allocation37_spill]] }
  0x4a   : > { %s3334_s24 = sld [smem:[#allocation36_spill]] }
  0x4b   : > { %s2976_s12 = scalar_lea.vmem %s3326_s5, %s2303_s27  ;;  %s3330_s5 = sld [smem:[#allocation33_spill]] }
  0x4c   : > { %s2989_s10 = scalar_lea.vmem %s3327_s15, %s2303_s27 }
  0x4d   : > { %3328 = sst [smem:[#allocation23_spill]] %s2989_s10  ;;  %s3002_s25 = scalar_lea.vmem %s3331_s20, %s2303_s27 }
  0x4e   : > { %s923_s30 = scalar_lea.vmem %s3332_s28, %s2956_s26  ;;  %937 = sbr.rel (%p2204_p2) target bundleno = 86 (0x56), region = 116 }
  0x4f   : > { %s931_s10 = scalar_lea.vmem %s3333_s2, %s2956_s26 }
  0x50   : > { %s3016_s4 = scalar_lea.vmem %s3334_s24, %s2308_s29 }
  0x51   : > { %s915_s11 = scalar_lea.vmem %s3330_s5, %s2956_s26 }
  0x53   : > { %v938_v0 = vld [vmem:[#allocation3] sm:$0xff]  ;;  %vm940_vm0 = vcmask 261120   ;;  %v939_v1 = vld [vmem:[#allocation3 + $0x8] sm:$0xff] }
  0x54   : > { %941 = vst.msk [vmem:[#allocation2] sm:$0xff] %vm940_vm0, %v938_v0 }
  0x55   : > { %942 = vst.msk [vmem:[#allocation2 + $0x8] sm:$0xff] %vm940_vm0, %v939_v1 }
  0x56 PF: > { %vm947_vm1 = vcmask 261120   ;;  %v2714_v6 = vmov 32.0   ;;  %v2310_v23 = vld [vmem:[%s2966_s18 + $0x8] sm:$0xff]  ;;  %v2309_v27 = vld [vmem:[%s2966_s18] sm:$0xff]  ;;  %s3335_s5 = scalar_lea.vmem [#allocation6], %s2940_s13  ;;  %s3336_s1 = scalar_lea.vmem [#allocation8], %s2940_s13 }
  0x57   : > { %2447 = vrcp.f32 %v2714_v6  ;;  %v2312_v24 = vld [vmem:[%s2971_s16 + $0x8] sm:$0xff]  ;;  %1045 = vmatpush.bf16.msra.mxu0 %v2310_v23  ;;  %v2311_v28 = vld [vmem:[%s2971_s16] sm:$0xff]  ;;  %s3337_s18 = scalar_lea.vmem %s3271_s6, %s2956_s26  ;;  %s3338_s28 = scalar_lea.vmem %s3272_s7, %s2956_s26  ;;  %vm1133_vm9 = vcmask 64512   ;;  %vm1199_vm10 = vcmask 1043456   ;;  %vm1615_vm12 = vcmask 130048  }
  0x58   : > { %1079 = vmatpush.bf16.msra.mxu2 %v2312_v24  ;;  %v2314_v34 = vld [vmem:[%s2976_s12 + $0x8] sm:$0xff]  ;;  %v2313_v36 = vld [vmem:[%s2976_s12] sm:$0xff]  ;;  %s2715_s0 = smov 120   ;;  %s2716_s3 = smov 112   ;;  %vm1618_vm13 = vcmask 195584  }
  0x59   : > { %v2437_v46 = vld [vmem:[%s3335_s5] ss:$0 sm:$0xff]  ;;  %s3339_s22 = scalar_lea.vmem %s3273_s8, %s2956_s26  ;;  %s2717_s19 = smov 104  }
  0x5a   : > { %v2438_v50 = vld [vmem:[%s3336_s1] ss:$0 sm:$0xff]  ;;  %s2719_s29 = smov 8   ;;  %s3340_s15 = sld [smem:[#allocation23_spill]] }
  0x5b   : > { %v3019_v2 = vld [vmem:[#allocation2] sm:$0xff]  ;;  %1046 = vmatpush.bf16.msra.mxu0 %v2309_v27  ;;  %s2720_s17 = smov 16   ;;  %s2721_s23 = smov 24  }
  0x5c   : > { %v948_v3 = vsel %vm947_vm1, %v3019_v2, 0.0  ;;  %v3023_v4 = vld [vmem:[#allocation2 + $0x8] sm:$0xff]  ;;  %1080 = vmatpush.bf16.msra.mxu2 %v2311_v28  ;;  %v2439_v62 = vld [vmem:[%s3337_s18] ss:$0 sm:$0xff]  ;;  %s3341_s5 = sld [smem:[#allocation31_spill]]  ;;  %p2298_p3 = scmp.ne.s32.totalorder %s2701_s21, 1 }
  0x5d   : > { %949 = vadd.xlane.f32.xlu0 %v948_v3  ;;  %v951_v5 = vsel %vm947_vm1, %v3023_v4, 0.0  ;;  %v2448_v7 = vpop.eup %2447  ;;  %v2440_v3 = vld [vmem:[%s3338_s28] ss:$0 sm:$0xff] }
  0x5e   : > { %v955_v8 = vmul.f32 32.0, %v2448_v7  ;;  %vm959_vm2 = vweird.f32 %v2448_v7  ;;  %v2441_v24 = vld [vmem:[%s3339_s22] ss:$0 sm:$0xff] }
  0x60   : > { %v956_v9 = vsub.f32 1.0, %v955_v8  ;;  %1113 = vmatpush.bf16.msrb.mxu2 %v2314_v34 }
  0x62   : > { %v957_v10 = vmul.f32 %v2448_v7, %v956_v9  ;;  %s3342_s1 = scalar_lea.vmem %s3341_s5, %s2956_s26  ;;  %s3347_s26 = sld [smem:[#allocation38_spill]] (!%p2298_p3) }
  0x64   : > { %v958_v11 = vadd.f32 %v2448_v7, %v957_v10  ;;  %1114 = vmatpush.bf16.msrb.mxu2 %v2313_v36 }
  0x65   : > { %952 = vadd.xlane.f32.xlu0 %v951_v5 }
  0x66   : > { %v3027_v12 = vsel %vm959_vm2, %v2448_v7, %v958_v11 }
  0xd0   : > { %v950_v13 = vpop.xlane.xlu0 %949 }
  0xd1   : > { %v961_v14 = vmul.f32 %v3027_v12, %v950_v13 }
  0xd3   : > { %v963_v15 = vsub.f32 %v3019_v2, %v961_v14 }
  0xd5   : > { %v965_v16 = vmul.f32 %v963_v15, %v963_v15 }
  0xd7   : > { %v967_v17 = vsel %vm947_vm1, %v965_v16, 0.0 }
  0xd8   : > { %968 = vadd.xlane.f32.xlu1 %v967_v17  ;;  %v953_v18 = vpop.xlane.xlu0 %952 }
  0xd9   : > { %v962_v19 = vmul.f32 %v3027_v12, %v953_v18 }
  0xdb   : > { %v964_v20 = vsub.f32 %v3023_v4, %v962_v19 }
  0xdd   : > { %v966_v21 = vmul.f32 %v964_v20, %v964_v20 }
  0xdf   : > { %v970_v22 = vsel %vm947_vm1, %v966_v21, 0.0 }
  0xe0   : > { %971 = vadd.xlane.f32.xlu1 %v970_v22 }
 0x14b   : > { %v969_v25 = vpop.xlane.xlu1 %968 }
 0x14c   : > { %v973_v26 = vmul.f32 %v969_v25, %v3027_v12 }
 0x14e   : > { %v975_v29 = vadd.f32 1e-05, %v973_v26 }
 0x150   : > { %2449 = vrsqrt.f32 %v975_v29  ;;  %vm983_vm4 = vweird.f32 %v975_v29 }
 0x153   : > { %v972_v30 = vpop.xlane.xlu1 %971 }
 0x154   : > { %v974_v31 = vmul.f32 %v972_v30, %v3027_v12 }
 0x156   : > { %v2450_v32 = vpop.eup %2449  ;;  %v976_v33 = vadd.f32 1e-05, %v974_v31 }
 0x157   : > { %v978_v35 = vmul.f32 %v2450_v32, %v975_v29  ;;  %vm984_vm3 = vweird.f32 %v2450_v32 }
 0x158   : > { %2451 = vrsqrt.f32 %v976_v33  ;;  %vm985_vm5 = vmor %vm983_vm4, %vm984_vm3  ;;  %vm993_vm7 = vweird.f32 %v976_v33 }
 0x159   : > { %v979_v37 = vmul.f32 %v2450_v32, %v978_v35 }
 0x15b   : > { %v980_v38 = vmul.f32 0.5, %v979_v37 }
 0x15d   : > { %v981_v39 = vsub.f32 1.5, %v980_v38 }
 0x15e   : > { %v2452_v40 = vpop.eup %2451 }
 0x15f   : > { %v982_v41 = vmul.f32 %v2450_v32, %v981_v39  ;;  %v988_v42 = vmul.f32 %v2452_v40, %v976_v33  ;;  %vm994_vm6 = vweird.f32 %v2452_v40 }
 0x160   : > { %vm995_vm8 = vmor %vm993_vm7, %vm994_vm6 }
 0x161   : > { %v986_v43 = vsel %vm985_vm5, %v2450_v32, %v982_v41  ;;  %v989_v44 = vmul.f32 %v2452_v40, %v988_v42 }
 0x162   : > { %v997_v45 = vmul.f32 %v986_v43, %v963_v15 }
 0x163   : > { %v990_v47 = vmul.f32 0.5, %v989_v44 }
 0x164   : > { %v1002_v49 = vmul.f32 %v2437_v46, %v997_v45  ;;  %v1121_v45 = vlaneseq }
 0x165   : > { %v991_v48 = vsub.f32 1.5, %v990_v47 }
 0x166   : > { %v1007_v54 = vadd.f32 %v2438_v50, %v1002_v49  ;;  %v1124_v49 = vand.u32 127, %v1121_v45 }
 0x167   : > { %v992_v51 = vmul.f32 %v2452_v40, %v991_v48  ;;  %v1122_v48 = vshrl.u32 %v1121_v45, 7 }
 0x168   : > { %v1009_v57 = vpack.c.bf16 %v1007_v54, %v1007_v54 }
 0x169   : > { %v996_v52 = vsel %vm995_vm8, %v2452_v40, %v992_v51  ;;  %vm1125_vm11 = vcmp.ge.s32.totalorder %v1122_v48, %v1124_v49 }
 0x16a   : > { %v998_v53 = vmul.f32 %v996_v52, %v964_v20  ;;  %v1021_v59 = vunpack.c.l.b16 %v1009_v57 }
 0x16c   : > { %v1003_v55 = vmul.f32 %v2437_v46, %v998_v53  ;;  %v2718_v53 = vmov -1e+09  }
 0x16d   : > { %v1126_v54 = vsel %vm1125_vm11, 0.0, %v2718_v53 }
 0x16e   : > { %v1008_v56 = vadd.f32 %v2438_v50, %v1003_v55 }
 0x170   : > { %v1010_v58 = vpack.c.bf16 %v1008_v56, %v1008_v56 }
 0x172   : > { %v1022_v60 = vunpack.c.l.b16 %v1010_v58 }
 0x174   : > { %v1023_v61 = vpack.c.b16 %v1022_v60, %v1021_v59 }
 0x176   : > { %2213 = vmatmul.msk.bf16.vlgmr.msra.gmra.mxu0 %vm947_vm1, %v1023_v61  ;;  %2222 = vmatmul.msk.bf16.vlgmr.msra.gmra.mxu2 %vm947_vm1, %v1023_v61 }
 0x186   : > { %2231 = vmatmul.msk.bf16.vlgmr.msrb.gmra.mxu2 %vm947_vm1, %v1023_v61 }
 0x1f3   : > { %v1048_v63 = vpop.f32.mrf.mxu0 }
 0x1f4   : > { %v1049_v0 = vadd.f32 %v2439_v62, %v1048_v63 }
 0x1f6   : > { %v1127_v1 = vpack.c.bf16 %v1049_v0, %v1049_v0 }
 0x1f8   : > { %v1236_v5 = vunpack.c.l.b16 %v1127_v1 }
 0x1f9   : > { %v1082_v6 = vpop.f32.mrf.mxu2 }
 0x1fa   : > { %v1237_v7 = vpack.c.b16 %v1236_v5, %v1236_v5  ;;  %v1083_v8 = vadd.f32 %v2440_v3, %v1082_v6 }
 0x1fb   : > { %v1050_v9 = vpop.f32.mrf.mxu0 }
 0x1fc   : > { %v1129_v10 = vpack.c.bf16 %v1083_v8, %v1083_v8  ;;  %v1051_v11 = vadd.f32 %v2439_v62, %v1050_v9  ;;  %1238 = vrot.lane.b32.xlu0 %v1237_v7, %s2715_s0 }
 0x1fe   : > { %v1241_v13 = vunpack.c.l.b16 %v1129_v10  ;;  %v1128_v14 = vpack.c.bf16 %v1051_v11, %v1051_v11  ;;  %v1138_v15 = vsel %vm1133_vm9, %v1129_v10, 0 }
 0x1ff   : > { %1147 = vmatpush.bf16.xpose.msra.mxu3 %v1138_v15 }
 0x200   : > { %v1242_v16 = vpack.c.b16 %v1241_v13, %v1241_v13  ;;  %v1265_v17 = vunpack.c.l.b16 %v1128_v14 }
 0x201   : > { %v1084_v18 = vpop.f32.mrf.mxu2 }
 0x202   : > { %v1266_v19 = vpack.c.b16 %v1265_v17, %v1265_v17  ;;  %v1085_v20 = vadd.f32 %v2440_v3, %v1084_v18  ;;  %1243 = vrot.lane.b32.xlu2 %v1242_v16, %s2715_s0 }
 0x204   : > { %v1130_v21 = vpack.c.bf16 %v1085_v20, %v1085_v20  ;;  %1267 = vrot.lane.b32.xlu1 %v1266_v19, %s2715_s0  ;;  %1388 = vrot.lane.b32.xlu0 %v1266_v19, %s2716_s3 }
 0x206   : > { %v1270_v22 = vunpack.c.l.b16 %v1130_v21  ;;  %2232 = vmatmul.msk.bf16.vlgmr.msra.gmra.mxu3 %vm1133_vm9, %v1127_v1  ;;  %v1157_v23 = vsel %vm1133_vm9, %v1130_v21, 0 }
 0x207   : > { %1166 = vmatpush.bf16.xpose.msrb.mxu0 %v1157_v23 }
 0x208   : > { %v1271_v25 = vpack.c.b16 %v1270_v22, %v1270_v22 }
 0x209   : > { %v1116_v26 = vpop.f32.mrf.mxu2 }
 0x20a   : > { %v1117_v27 = vadd.f32 %v2441_v24, %v1116_v26  ;;  %1272 = vrot.lane.b32.xlu2 %v1271_v25, %s2715_s0 }
 0x20c   : > { %v3073_v28 = vpack.c.bf16 %v1117_v27, %v1117_v27  ;;  %1502 = vrot.lane.b32.xlu1 %v1271_v25, %s2717_s19  ;;  %1477 = vrot.lane.b32.xlu0 %v1237_v7, %s2717_s19 }
 0x20e   : > { %2233 = vmatmul.msk.bf16.vlgmr.msrb.gmra.mxu0 %vm1133_vm9, %v1128_v14  ;;  %v1201_v29 = vsel %vm1199_vm10, %v3073_v28, 0 }
 0x20f   : > { %1210 = vmatpush.bf16.msra.mxu1 %v1201_v29 }
 0x211   : > { %v1118_v30 = vpop.f32.mrf.mxu2 }
 0x212   : > { %v1119_v31 = vadd.f32 %v2441_v24, %v1118_v30  ;;  %1367 = vrot.lane.b32.xlu2 %v1242_v16, %s2716_s3 }
 0x214   : > { %v3081_v32 = vpack.c.bf16 %v1119_v31, %v1119_v31 }
 0x216   : > { %v1220_v33 = vsel %vm1199_vm10, %v3081_v32, 0 }
 0x217   : > { %1229 = vmatpush.bf16.msra.mxu2 %v1220_v33 }
 0x21a   : > { %1390 = vrot.lane.b32.xlu2 %v1271_v25, %s2716_s3 }
 0x222   : > { %1365 = vrot.lane.b32.xlu2 %v1237_v7, %s2716_s3 }
 0x22a   : > { %1479 = vrot.lane.b32.xlu2 %v1242_v16, %s2717_s19 }
 0x232   : > { %1500 = vrot.lane.b32.xlu2 %v1266_v19, %s2717_s19 }
 0x25c   : > { %v1244_v34 = vpop.permute.xlu2 %1243 }
 0x25d   : > { %v1249_v35 = vsel %vm1133_vm9, %v1244_v34, 0 }
 0x25e   : > { %1258 = vmatpush.bf16.xpose.msrb.mxu3 %v1249_v35 }
 0x264   : > { %v1273_v36 = vpop.permute.xlu2 %1272 }
 0x265   : > { %v1278_v37 = vsel %vm1133_vm9, %v1273_v36, 0 }
 0x266   : > { %1287 = vmatpush.bf16.xpose.msra.mxu0 %v1278_v37 }
 0x26c   : > { %v1368_v38 = vpop.permute.xlu2 %1367 }
 0x26d   : > { %v1373_v39 = vsel %vm1133_vm9, %v1368_v38, 0 }
 0x26e   : > { %v1239_v40 = vpop.permute.xlu0 %1238  ;;  %1382 = vmatpush.bf16.xpose.msra.mxu3 %v1373_v39 }
 0x26f   : > { %2236 = vmatmul.msk.bf16.vlgmr.msrb.gmra.mxu3 %vm1133_vm9, %v1239_v40  ;;  %v1318_v40 = vunpack.c.l.b16 %v3073_v28 }
 0x274   : > { %v1391_v41 = vpop.permute.xlu2 %1390 }
 0x275   : > { %v1396_v42 = vsel %vm1133_vm9, %v1391_v41, 0  ;;  %v1342_v41 = vunpack.c.l.b16 %v3081_v32 }
 0x276   : > { %v1268_v43 = vpop.permute.xlu1 %1267  ;;  %1405 = vmatpush.bf16.xpose.msrb.mxu0 %v1396_v42  ;;  %v1389_v50 = vpop.permute.xlu0 %1388  ;;  %v3116_v42 = vpack.c.b16 %v1318_v40, %v1318_v40 }
 0x277   : > { %2237 = vmatmul.msk.bf16.vlgmr.msra.gmra.mxu0 %vm1133_vm9, %v1268_v43  ;;  %v3120_v43 = vpack.c.b16 %v1342_v41, %v1342_v41 }
 0x27c   : > { %v1366_v44 = vpop.permute.xlu2 %1365 }
 0x27e   : > { %v1503_v46 = vpop.permute.xlu1 %1502  ;;  %v1478_v60 = vpop.permute.xlu0 %1477 }
 0x27f   : > { %v1508_v47 = vsel %vm1133_vm9, %v1503_v46, 0  ;;  %2240 = vmatmul.msk.bf16.vlgmr.msra.gmra.mxu3 %vm1133_vm9, %v1366_v44 }
 0x280   : > { %1517 = vmatpush.bf16.xpose.msra.mxu0 %v1508_v47 }
 0x284   : > { %v1480_v51 = vpop.permute.xlu2 %1479 }
 0x285   : > { %v1485_v52 = vsel %vm1133_vm9, %v1480_v51, 0 }
 0x286   : > { %1494 = vmatpush.bf16.xpose.msrb.mxu3 %v1485_v52 }
 0x287   : > { %2241 = vmatmul.msk.bf16.vlgmr.msrb.gmra.mxu0 %vm1133_vm9, %v1389_v50 }
 0x289   : > { %v1149_v55 = vpop.f32.mrf.mxu3 }
 0x28a   : > { %v1150_v56 = vadd.f32 %v1149_v55, %v1126_v54 }
 0x28b   : > { %v1168_v57 = vpop.f32.mrf.mxu0 }
 0x28c   : > { %v1169_v58 = vadd.f32 %v1168_v57, %v1126_v54  ;;  %v1172_v59 = vsel %vm1133_vm9, %v1150_v56, -inf  ;;  %v1501_v0 = vpop.permute.xlu2 %1500 }
 0x28d   : > { %1173 = vmax.xlane.f32.xlu0 %v1172_v59 }
 0x28e   : > { %v1175_v61 = vsel %vm1133_vm9, %v1169_v58, -inf }
 0x28f   : > { %1176 = vmax.xlane.f32.xlu1 %v1175_v61  ;;  %2244 = vmatmul.msk.bf16.vlgmr.msrb.gmra.mxu3 %vm1133_vm9, %v1478_v60 }
 0x291   : > { %v1151_v62 = vpop.f32.mrf.mxu3 }
 0x293   : > { %v1170_v63 = vpop.f32.mrf.mxu0 }
 0x297   : > { %2245 = vmatmul.msk.bf16.vlgmr.msra.gmra.mxu0 %vm1133_vm9, %v1501_v0 }
 0x2f2   : > { %v1260_v1 = vpop.f32.mrf.mxu3 }
 0x2f3   : > { %v1261_v3 = vadd.f32 %v1260_v1, %v1126_v54 }
 0x2f4   : > { %v1289_v5 = vpop.f32.mrf.mxu0 }
 0x2f5   : > { %v1290_v6 = vadd.f32 %v1289_v5, %v1126_v54  ;;  %v1293_v7 = vsel %vm1133_vm9, %v1261_v3, -inf }
 0x2f6   : > { %1294 = vmax.xlane.f32.xlu1 %v1293_v7 }
 0x2f7   : > { %v1296_v8 = vsel %vm1133_vm9, %v1290_v6, -inf }
 0x2f8   : > { %1297 = vmax.xlane.f32.xlu2 %v1296_v8 }
 0x2fa   : > { %v1262_v9 = vpop.f32.mrf.mxu3 }
 0x2fc   : > { %v1291_v10 = vpop.f32.mrf.mxu0 }
 0x300   : > { %v1174_v11 = vpop.xlane.xlu0 %1173 }
 0x301   : > { %v1178_v13 = vsub.f32 %v1150_v56, %v1174_v11 }
 0x302   : > { %v1177_v14 = vpop.xlane.xlu1 %1176  ;;  %v1384_v15 = vpop.f32.mrf.mxu3 }
 0x303   : > { %v1180_v16 = vmul.f32 1.442695, %v1178_v13  ;;  %v1179_v17 = vsub.f32 %v1169_v58, %v1177_v14  ;;  %v1385_v18 = vadd.f32 %v1384_v15, %v1126_v54 }
 0x304   : > { %v1407_v19 = vpop.f32.mrf.mxu0 }
 0x305   : > { %2453 = vpow2.f32 %v1180_v16  ;;  %v1182_v20 = vmul.f32 1.442695, %v1179_v17  ;;  %v1411_v21 = vsel %vm1133_vm9, %v1385_v18, -inf  ;;  %v1408_v29 = vadd.f32 %v1407_v19, %v1126_v54 }
 0x306   : > { %1412 = vmax.xlane.f32.xlu2 %v1411_v21 }
 0x307   : > { %2455 = vpow2.f32 %v1182_v20  ;;  %v1414_v36 = vsel %vm1133_vm9, %v1408_v29, -inf }
 0x30a   : > { %v1386_v22 = vpop.f32.mrf.mxu3 }
 0x30b   : > { %v2454_v23 = vpop.eup %2453 }
 0x30c   : > { %v1409_v24 = vpop.f32.mrf.mxu0  ;;  %v1184_v25 = vsel %vm1133_vm9, %v2454_v23, 0.0 }
 0x30d   : > { %v2456_v26 = vpop.eup %2455  ;;  %1185 = vadd.xlane.f32.xlu1 %v1184_v25 }
 0x30e   : > { %v1187_v27 = vsel %vm1133_vm9, %v2456_v26, 0.0 }
 0x30f   : > { %1188 = vadd.xlane.f32.xlu0 %v1187_v27 }
 0x312   : > { %v1496_v30 = vpop.f32.mrf.mxu3 }
 0x313   : > { %v3108_v31 = vadd.f32 %v1496_v30, %v1126_v54 }
 0x314   : > { %v1519_v33 = vpop.f32.mrf.mxu0 }
 0x315   : > { %v1520_v34 = vadd.f32 %v1519_v33, %v1126_v54  ;;  %v1523_v35 = vsel %vm1133_vm9, %v3108_v31, -inf }
 0x316   : > { %1524 = vmax.xlane.f32.xlu2 %v1523_v35 }
 0x317   : > { %1415 = vmax.xlane.f32.xlu0 %v1414_v36  ;;  %v1526_v37 = vsel %vm1133_vm9, %v1520_v34, -inf }
 0x318   : > { %1527 = vmax.xlane.f32.xlu1 %v1526_v37 }
 0x31a   : > { %v1498_v38 = vpop.f32.mrf.mxu3 }
 0x31c   : > { %v1521_v39 = vpop.f32.mrf.mxu0 }
 0x32b   : > { %1320 = vrot.lane.b32.xlu0 %v3116_v42, %s2715_s0 }
 0x32e   : > { %1456 = vrot.lane.b32.xlu2 %v3120_v43, %s2716_s3 }
 0x331   : > { %1344 = vrot.lane.b32.xlu1 %v3120_v43, %s2715_s0 }
 0x369   : > { %v1295_v44 = vpop.xlane.xlu1 %1294 }
 0x36a   : > { %v1299_v45 = vsub.f32 %v1261_v3, %v1295_v44 }
 0x36b   : > { %v1298_v46 = vpop.xlane.xlu2 %1297 }
 0x36c   : > { %v1301_v47 = vmul.f32 1.442695, %v1299_v45  ;;  %v1300_v28 = vsub.f32 %v1290_v6, %v1298_v46 }
 0x36e   : > { %2457 = vpow2.f32 %v1301_v47  ;;  %v1303_v32 = vmul.f32 1.442695, %v1300_v28 }
 0x370   : > { %2459 = vpow2.f32 %v1303_v32 }
 0x374   : > { %v3126_v48 = vpop.eup %2457 }
 0x375   : > { %v1305_v49 = vsel %vm1133_vm9, %v3126_v48, 0.0 }
 0x376   : > { %v3130_v50 = vpop.eup %2459  ;;  %1306 = vadd.xlane.f32.xlu2 %v1305_v49 }
 0x377   : > { %v1308_v51 = vsel %vm1133_vm9, %v3130_v50, 0.0 }
 0x378   : > { %1309 = vadd.xlane.f32.xlu0 %v1308_v51 }
 0x379   : > { %v1413_v52 = vpop.xlane.xlu2 %1412 }
 0x37a   : > { %v1417_v53 = vsub.f32 %v1385_v18, %v1413_v52 }
 0x37c   : > { %v1419_v54 = vmul.f32 1.442695, %v1417_v53 }
 0x37e   : > { %2461 = vpow2.f32 %v1419_v54 }
 0x380   : > { %v1186_v55 = vpop.xlane.xlu1 %1185 }
 0x381   : > { %2463 = vrcp.f32 %v1186_v55 }
 0x382   : > { %v1189_v56 = vpop.xlane.xlu0 %1188 }
 0x383   : > { %2465 = vrcp.f32 %v1189_v56 }
 0x384   : > { %v2462_v57 = vpop.eup %2461 }
 0x385   : > { %v1423_v58 = vsel %vm1133_vm9, %v2462_v57, 0.0 }
 0x386   : > { %1424 = vadd.xlane.f32.xlu2 %v1423_v58 }
 0x387   : > { %v2464_v59 = vpop.eup %2463 }
 0x388   : > { %v1192_v60 = vmul.f32 %v2464_v59, %v2454_v23 }
 0x389   : > { %v2466_v61 = vpop.eup %2465  ;;  %v1525_v14 = vpop.xlane.xlu2 %1524 }
 0x38a   : > { %v1193_v62 = vmul.f32 %v2466_v61, %v2456_v26  ;;  %v1416_v63 = vpop.xlane.xlu0 %1415  ;;  %v1194_v0 = vpack.c.bf16 %v1192_v60, %v1192_v60  ;;  %v1529_v19 = vsub.f32 %v3108_v31, %v1525_v14  ;;  %v2315_v14 = vld [vmem:[%s3340_s15] sm:$0xff] }
 0x38b   : > { %v1418_v1 = vsub.f32 %v1408_v29, %v1416_v63  ;;  %v1528_v3 = vpop.xlane.xlu1 %1527 }
 0x38c   : > { %v1195_v5 = vpack.c.bf16 %v1193_v62, %v1193_v62  ;;  %v1530_v6 = vsub.f32 %v1520_v34, %v1528_v3  ;;  %1435 = vrot.lane.b32.xlu0 %v3116_v42, %s2716_s3  ;;  %2234 = vmatmul.msk.bf16.vlgmr.msra.gmra.mxu1 %vm1133_vm9, %v1194_v0  ;;  %v1531_v22 = vmul.f32 1.442695, %v1529_v19  ;;  %s3348_s3 = sld [smem:[#allocation39_spill]] (!%p2298_p3) }
 0x38d   : > { %v1421_v7 = vmul.f32 1.442695, %v1418_v1 }
 0x38e   : > { %v1533_v8 = vmul.f32 1.442695, %v1530_v6  ;;  %2235 = vmatmul.msk.bf16.vlgmr.msra.gmra.mxu2 %vm1133_vm9, %v1195_v5 }
 0x38f   : > { %2467 = vpow2.f32 %v1421_v7 }
 0x390   : > { %2469 = vpow2.f32 %v1533_v8 }
 0x391   : > { %v1457_v17 = vpop.permute.xlu2 %1456  ;;  %2471 = vpow2.f32 %v1531_v22 }
 0x392   : > { %v1462_v21 = vsel %vm1199_vm10, %v1457_v17, 0 }
 0x395   : > { %v2468_v9 = vpop.eup %2467 }
 0x396   : > { %v3139_v10 = vpop.eup %2469  ;;  %v1426_v11 = vsel %vm1133_vm9, %v2468_v9, 0.0 }
 0x397   : > { %1427 = vadd.xlane.f32.xlu2 %v1426_v11  ;;  %v1538_v13 = vsel %vm1133_vm9, %v3139_v10, 0.0  ;;  %v2472_v23 = vpop.eup %2471 }
 0x398   : > { %1539 = vadd.xlane.f32.xlu1 %v1538_v13  ;;  %v1535_v24 = vsel %vm1133_vm9, %v2472_v23, 0.0  ;;  %v2316_v13 = vld [vmem:[%s3340_s15 + $0x8] sm:$0xff] }
 0x399   : > { %1651 = vmatpush.bf16.msra.mxu3 %v2316_v13 }
 0x39d   : > { %v1321_v15 = vpop.permute.xlu0 %1320  ;;  %1652 = vmatpush.bf16.msra.mxu3 %v2315_v14 }
 0x39e   : > { %v1326_v16 = vsel %vm1199_vm10, %v1321_v15, 0 }
 0x39f   : > { %1335 = vmatpush.bf16.msrb.mxu1 %v1326_v16 }
 0x3a3   : > { %v1345_v18 = vpop.permute.xlu1 %1344 }
 0x3a4   : > { %v1350_v20 = vsel %vm1199_vm10, %v1345_v18, 0 }
 0x3a5   : > { %1359 = vmatpush.bf16.msrb.mxu2 %v1350_v20 }
 0x3a9   : > { %1471 = vmatpush.bf16.msra.mxu2 %v1462_v21 }
 0x3af   : > { %1568 = vrot.lane.b32.xlu2 %v3120_v43, %s2717_s19 }
 0x3b6   : > { %1536 = vadd.xlane.f32.xlu0 %v1535_v24 }
 0x3b7   : > { %1547 = vrot.lane.b32.xlu2 %v3116_v42, %s2717_s19 }
 0x3e9   : > { %v1307_v25 = vpop.xlane.xlu2 %1306 }
 0x3ea   : > { %2473 = vrcp.f32 %v1307_v25 }
 0x3eb   : > { %v1310_v26 = vpop.xlane.xlu0 %1309 }
 0x3ec   : > { %2475 = vrcp.f32 %v1310_v26 }
 0x3f0   : > { %v2474_v27 = vpop.eup %2473 }
 0x3f1   : > { %v1313_v29 = vmul.f32 %v2474_v27, %v3126_v48 }
 0x3f2   : > { %v2476_v30 = vpop.eup %2475 }
 0x3f3   : > { %v1314_v31 = vmul.f32 %v2476_v30, %v3130_v50  ;;  %v1315_v33 = vpack.c.bf16 %v1313_v29, %v1313_v29 }
 0x3f5   : > { %v1316_v34 = vpack.c.bf16 %v1314_v31, %v1314_v31  ;;  %2238 = vmatmul.msk.bf16.vlgmr.msrb.gmra.mxu1 %vm1133_vm9, %v1315_v33  ;;  %v2442_v33 = vld [vmem:[%s3342_s1] ss:$0 sm:$0xff] }
 0x3f7   : > { %2239 = vmatmul.msk.bf16.vlgmr.msrb.gmra.mxu2 %vm1133_vm9, %v1316_v34 }
 0x3f9   : > { %v1425_v35 = vpop.xlane.xlu2 %1424 }
 0x3fa   : > { %2477 = vrcp.f32 %v1425_v35 }
 0x3fe   : > { %v1436_v36 = vpop.permute.xlu0 %1435 }
 0x3ff   : > { %v1441_v37 = vsel %vm1199_vm10, %v1436_v36, 0 }
 0x400   : > { %v2478_v38 = vpop.eup %2477  ;;  %1450 = vmatpush.bf16.msra.mxu1 %v1441_v37 }
 0x401   : > { %v1431_v39 = vmul.f32 %v2478_v38, %v2462_v57 }
 0x403   : > { %v1433_v40 = vpack.c.bf16 %v1431_v39, %v1431_v39 }
 0x405   : > { %2242 = vmatmul.msk.bf16.vlgmr.msra.gmra.mxu1 %vm1133_vm9, %v1433_v40 }
 0x409   : > { %v3159_v41 = vpop.f32.mrf.mxu1 }
 0x40a   : > { %v1428_v42 = vpop.xlane.xlu2 %1427 }
 0x40b   : > { %2479 = vrcp.f32 %v1428_v42  ;;  %v1540_v48 = vpop.xlane.xlu1 %1539 }
 0x40c   : > { %2481 = vrcp.f32 %v1540_v48 }
 0x411   : > { %v2480_v43 = vpop.eup %2479  ;;  %v1214_v44 = vpop.f32.mrf.mxu1 }
 0x412   : > { %v1231_v45 = vpop.f32.mrf.mxu2  ;;  %v1432_v46 = vmul.f32 %v2480_v43, %v2468_v9  ;;  %v1569_v47 = vpop.permute.xlu2 %1568 }
 0x413   : > { %v1574_v28 = vsel %vm1199_vm10, %v1569_v47, 0  ;;  %v2482_v52 = vpop.eup %2481 }
 0x414   : > { %v1434_v32 = vpack.c.bf16 %v1432_v46, %v1432_v46  ;;  %1583 = vmatpush.bf16.msrb.mxu2 %v1574_v28  ;;  %v1544_v53 = vmul.f32 %v2482_v52, %v3139_v10  ;;  %v2317_v52 = vld [vmem:[%s3002_s25] sm:$0xff] }
 0x416   : > { %2243 = vmatmul.msk.bf16.vlgmr.msra.gmra.mxu2 %vm1133_vm9, %v1434_v32  ;;  %v1546_v54 = vpack.c.bf16 %v1544_v53, %v1544_v53 }
 0x41a   : > { %v1233_v49 = vpop.f32.mrf.mxu2  ;;  %v1548_v50 = vpop.permute.xlu2 %1547 }
 0x41b   : > { %v1553_v51 = vsel %vm1199_vm10, %v1548_v50, 0  ;;  %v2318_v50 = vld [vmem:[%s3002_s25 + $0x8] sm:$0xff]  ;;  %s3343_s25 = scalar_lea.vmem [#allocation9], %s2940_s13 }
 0x41c   : > { %1562 = vmatpush.bf16.msrb.mxu1 %v1553_v51  ;;  %1753 = vmatpush.bf16.msrb.mxu0 %v2318_v50 }
 0x420   : > { %1754 = vmatpush.bf16.msrb.mxu0 %v2317_v52 }
 0x426   : > { %2247 = vmatmul.msk.bf16.vlgmr.msrb.gmra.mxu2 %vm1133_vm9, %v1546_v54 }
 0x429   : > { %v1537_v55 = vpop.xlane.xlu0 %1536 }
 0x42a   : > { %2483 = vrcp.f32 %v1537_v55 }
 0x430   : > { %v2484_v56 = vpop.eup %2483 }
 0x431   : > { %v1543_v57 = vmul.f32 %v2484_v56, %v2472_v23 }
 0x433   : > { %v1545_v58 = vpack.c.bf16 %v1543_v57, %v1543_v57 }
 0x435   : > { %2246 = vmatmul.msk.bf16.vlgmr.msrb.gmra.mxu1 %vm1133_vm9, %v1545_v58 }
 0x472   : > { %v1337_v59 = vpop.f32.mrf.mxu1 }
 0x47a   : > { %v1339_v60 = vpop.f32.mrf.mxu1  ;;  %v1361_v61 = vpop.f32.mrf.mxu2 }
 0x47b   : > { %v2422_v62 = vpack.i.bf16 %v1361_v61, %v1337_v59 }
 0x47d   : > { %2423 = vrot.lane.b32.xlu2 %v2422_v62, %s2719_s29 }
 0x482   : > { %v1363_v63 = vpop.f32.mrf.mxu2  ;;  %v1452_v0 = vpop.f32.mrf.mxu1 }
 0x48a   : > { %v1454_v1 = vpop.f32.mrf.mxu1 }
 0x499   : > { %v1473_v3 = vpop.f32.mrf.mxu2 }
 0x49a   : > { %v2427_v5 = vpack.i.bf16 %v1473_v3, %v1452_v0  ;;  %v2443_v3 = vld [vmem:[%s3343_s25] ss:$0 sm:$0xff] }
 0x49c   : > { %2428 = vrot.lane.b32.xlu1 %v2427_v5, %s2720_s17 }
 0x4a1   : > { %v1475_v6 = vpop.f32.mrf.mxu2 }
 0x4a9   : > { %v1585_v7 = vpop.f32.mrf.mxu2 }
 0x4b1   : > { %v1587_v8 = vpop.f32.mrf.mxu2 }
 0x4b2   : > { %v1564_v9 = vpop.f32.mrf.mxu1  ;;  %v2444_v8 = vld [vmem:[%s915_s11] ss:$0 sm:$0xff] }
 0x4b3   : > { %v2432_v10 = vpack.i.bf16 %v1585_v7, %v1564_v9 }
 0x4b5   : > { %2433 = vrot.lane.b32.xlu2 %v2432_v10, %s2721_s23 }
 0x4ba   : > { %v1566_v11 = vpop.f32.mrf.mxu1 }
 0x4d7   : > { %v2424_v15 = vpop.permute.xlu2 %2423 }
 0x4d8   : > { %v2426_v16 = vunpack.i.h.bf16 %v2424_v15  ;;  %v2425_v17 = vunpack.i.l.bf16 %v2424_v15 }
 0x4da   : > { %v1614_v22 = vsel %vm1133_vm9, %v1231_v45, %v2426_v16  ;;  %v1613_v23 = vsel %vm1133_vm9, %v3159_v41, %v2425_v17 }
 0x50e   : > { %v2429_v18 = vpop.permute.xlu1 %2428 }
 0x50f   : > { %v2431_v19 = vunpack.i.h.bf16 %v2429_v18  ;;  %v2430_v20 = vunpack.i.l.bf16 %v2429_v18  ;;  %v2434_v21 = vpop.permute.xlu2 %2433 }
 0x510   : > { %v2436_v24 = vunpack.i.h.bf16 %v2434_v21  ;;  %v2435_v25 = vunpack.i.l.bf16 %v2434_v21 }
 0x511   : > { %v1617_v26 = vsel %vm1615_vm12, %v1614_v22, %v2431_v19  ;;  %v1616_v27 = vsel %vm1615_vm12, %v1613_v23, %v2430_v20  ;;  %v2326_v22 = vld [vmem:[%s3016_s4 + $0x38] sm:$0xff]  ;;  %v2325_v23 = vld [vmem:[%s3016_s4 + $0x30] sm:$0xff] }
 0x512   : > { %v1620_v29 = vsel %vm1618_vm13, %v1617_v26, %v2436_v24  ;;  %v1619_v30 = vsel %vm1618_vm13, %v1616_v27, %v2435_v25  ;;  %1848 = vmatpush.bf16.msra.mxu1 %v2326_v22  ;;  %v2324_v24 = vld [vmem:[%s3016_s4 + $0x28] sm:$0xff]  ;;  %v2323_v25 = vld [vmem:[%s3016_s4 + $0x20] sm:$0xff]  ;;  %v2322_v26 = vld [vmem:[%s3016_s4 + $0x18] sm:$0xff] }
 0x513   : > { %v1621_v31 = vpack.c.bf16 %v1620_v29, %v1619_v30  ;;  %v2321_v27 = vld [vmem:[%s3016_s4 + $0x10] sm:$0xff]  ;;  %v2320_v29 = vld [vmem:[%s3016_s4 + $0x8] sm:$0xff]  ;;  %v2319_v30 = vld [vmem:[%s3016_s4] sm:$0xff] }
 0x515   : > { %2256 = vmatmul.msk.bf16.vlgmr.msra.gmra.mxu3 %vm947_vm1, %v1621_v31  ;;  %v2445_v31 = vld [vmem:[%s923_s30] ss:$0 sm:$0xff] }
 0x516   : > { %1849 = vmatpush.bf16.msra.mxu1 %v2325_v23 }
 0x51a   : > { %1850 = vmatpush.bf16.msra.mxu1 %v2324_v24 }
 0x51e   : > { %1851 = vmatpush.bf16.msra.mxu1 %v2323_v25 }
 0x522   : > { %1852 = vmatpush.bf16.msra.mxu1 %v2322_v26 }
 0x526   : > { %1853 = vmatpush.bf16.msra.mxu1 %v2321_v27 }
 0x52a   : > { %1854 = vmatpush.bf16.msra.mxu1 %v2320_v29 }
 0x52e   : > { %1855 = vmatpush.bf16.msra.mxu1 %v2319_v30 }
 0x598   : > { %v1654_v34 = vpop.f32.mrf.mxu3 }
 0x599   : > { %v1655_v35 = vadd.f32 %v2442_v33, %v1654_v34 }
 0x59b   : > { %v3179_v36 = vadd.f32 %v1655_v35, %v3019_v2 }
 0x59d   : > { %v1663_v37 = vsel %vm947_vm1, %v3179_v36, 0.0 }
 0x59e   : > { %1664 = vadd.xlane.f32.xlu0 %v1663_v37 }
 0x5a0   : > { %v1656_v38 = vpop.f32.mrf.mxu3 }
 0x5a1   : > { %v1657_v39 = vadd.f32 %v2442_v33, %v1656_v38 }
 0x5a3   : > { %v3184_v40 = vadd.f32 %v1657_v39, %v3023_v4 }
 0x5a5   : > { %v1666_v41 = vsel %vm947_vm1, %v3184_v40, 0.0 }
 0x5a6   : > { %1667 = vadd.xlane.f32.xlu2 %v1666_v41 }
 0x611   : > { %v1665_v42 = vpop.xlane.xlu0 %1664 }
 0x612   : > { %v1669_v43 = vmul.f32 %v1665_v42, %v3027_v12 }
 0x614   : > { %v1671_v2 = vsub.f32 %v3179_v36, %v1669_v43 }
 0x616   : > { %v1673_v44 = vmul.f32 %v1671_v2, %v1671_v2 }
 0x618   : > { %v1675_v45 = vsel %vm947_vm1, %v1673_v44, 0.0 }
 0x619   : > { %v1668_v46 = vpop.xlane.xlu2 %1667  ;;  %1676 = vadd.xlane.f32.xlu0 %v1675_v45 }
 0x61a   : > { %v1670_v47 = vmul.f32 %v1668_v46, %v3027_v12 }
 0x61c   : > { %v1672_v4 = vsub.f32 %v3184_v40, %v1670_v47 }
 0x61e   : > { %v1674_v28 = vmul.f32 %v1672_v4, %v1672_v4 }
 0x620   : > { %v1678_v32 = vsel %vm947_vm1, %v1674_v28, 0.0 }
 0x621   : > { %1679 = vadd.xlane.f32.xlu0 %v1678_v32 }
 0x68c   : > { %v1677_v48 = vpop.xlane.xlu0 %1676 }
 0x68d   : > { %v1681_v49 = vmul.f32 %v1677_v48, %v3027_v12 }
 0x68f   : > { %v1683_v51 = vadd.f32 1e-05, %v1681_v49 }
 0x691   : > { %2485 = vrsqrt.f32 %v1683_v51  ;;  %vm1691_vm15 = vweird.f32 %v1683_v51 }
 0x694   : > { %v1680_v53 = vpop.xlane.xlu0 %1679 }
 0x695   : > { %v1682_v54 = vmul.f32 %v1680_v53, %v3027_v12 }
 0x697   : > { %v2486_v55 = vpop.eup %2485  ;;  %v1684_v56 = vadd.f32 1e-05, %v1682_v54  ;;  %v2446_v54 = vld [vmem:[%s931_s10] ss:$0 sm:$0xff] }
 0x698   : > { %v1686_v57 = vmul.f32 %v2486_v55, %v1683_v51  ;;  %vm1692_vm14 = vweird.f32 %v2486_v55 }
 0x699   : > { %2487 = vrsqrt.f32 %v1684_v56  ;;  %vm1693_vm0 = vmor %vm1691_vm15, %vm1692_vm14  ;;  %vm1701_vm3 = vweird.f32 %v1684_v56 }
 0x69a   : > { %v1687_v58 = vmul.f32 %v2486_v55, %v1686_v57 }
 0x69c   : > { %v1688_v59 = vmul.f32 0.5, %v1687_v58 }
 0x69e   : > { %v1689_v60 = vsub.f32 1.5, %v1688_v59 }
 0x69f   : > { %v2488_v61 = vpop.eup %2487 }
 0x6a0   : > { %v1690_v62 = vmul.f32 %v2486_v55, %v1689_v60  ;;  %v1696_v63 = vmul.f32 %v2488_v61, %v1684_v56  ;;  %vm1702_vm2 = vweird.f32 %v2488_v61 }
 0x6a1   : > { %vm1703_vm4 = vmor %vm1701_vm3, %vm1702_vm2 }
 0x6a2   : > { %v1694_v0 = vsel %vm1693_vm0, %v2486_v55, %v1690_v62  ;;  %v1697_v1 = vmul.f32 %v2488_v61, %v1696_v63 }
 0x6a3   : > { %v1705_v5 = vmul.f32 %v1694_v0, %v1671_v2 }
 0x6a4   : > { %v1698_v6 = vmul.f32 0.5, %v1697_v1 }
 0x6a5   : > { %v1710_v9 = vmul.f32 %v2443_v3, %v1705_v5 }
 0x6a6   : > { %v1699_v7 = vsub.f32 1.5, %v1698_v6 }
 0x6a7   : > { %v1715_v13 = vadd.f32 %v2444_v8, %v1710_v9 }
 0x6a8   : > { %v1700_v10 = vmul.f32 %v2488_v61, %v1699_v7 }
 0x6a9   : > { %v1717_v16 = vpack.c.bf16 %v1715_v13, %v1715_v13 }
 0x6aa   : > { %v1704_v11 = vsel %vm1703_vm4, %v2488_v61, %v1700_v10 }
 0x6ab   : > { %v1706_v14 = vmul.f32 %v1704_v11, %v1672_v4  ;;  %v1729_v19 = vunpack.c.l.b16 %v1717_v16 }
 0x6ad   : > { %v1711_v15 = vmul.f32 %v2443_v3, %v1706_v14 }
 0x6af   : > { %v1716_v17 = vadd.f32 %v2444_v8, %v1711_v15 }
 0x6b1   : > { %v1718_v18 = vpack.c.bf16 %v1716_v17, %v1716_v17 }
 0x6b3   : > { %v1730_v20 = vunpack.c.l.b16 %v1718_v18 }
 0x6b5   : > { %v1731_v21 = vpack.c.b16 %v1730_v20, %v1729_v19 }
 0x6b7   : > { %2265 = vmatmul.msk.bf16.vlgmr.msrb.gmra.mxu0 %vm947_vm1, %v1731_v21 }
 0x734   : > { %v1756_v33 = vpop.f32.mrf.mxu0 }
 0x735   : > { %v1757_v34 = vadd.f32 %v2445_v31, %v1756_v33 }
 0x737   : > { %v1763_v35 = vmul.f32 0.044715, %v1757_v34  ;;  %v1761_v48 = vmul.f32 0.5, %v1757_v34 }
 0x739   : > { %v1765_v37 = vmul.f32 %v1763_v35, %v1757_v34 }
 0x73b   : > { %v1767_v38 = vmul.f32 %v1765_v37, %v1757_v34 }
 0x73c   : > { %v1758_v39 = vpop.f32.mrf.mxu0 }
 0x73d   : > { %v1769_v41 = vadd.f32 %v1767_v38, %v1757_v34  ;;  %v1759_v42 = vadd.f32 %v2445_v31, %v1758_v39 }
 0x73f   : > { %v1764_v43 = vmul.f32 0.044715, %v1759_v42  ;;  %v1771_v2 = vmul.f32 0.7978846, %v1769_v41  ;;  %v1762_v49 = vmul.f32 0.5, %v1759_v42 }
 0x741   : > { %v1766_v44 = vmul.f32 %v1764_v43, %v1759_v42  ;;  %2489 = vtanh.f32 %v1771_v2 }
 0x743   : > { %v1768_v45 = vmul.f32 %v1766_v44, %v1759_v42 }
 0x745   : > { %v1770_v46 = vadd.f32 %v1768_v45, %v1759_v42 }
 0x747   : > { %v1772_v47 = vmul.f32 0.7978846, %v1770_v46  ;;  %v2490_v4 = vpop.eup %2489 }
 0x748   : > { %v1775_v28 = vadd.f32 1.0, %v2490_v4 }
 0x749   : > { %2491 = vtanh.f32 %v1772_v47 }
 0x74a   : > { %v1777_v51 = vmul.f32 %v1775_v28, %v1761_v48 }
 0x74f   : > { %v2492_v32 = vpop.eup %2491 }
 0x750   : > { %v1776_v50 = vadd.f32 1.0, %v2492_v32 }
 0x752   : > { %v1778_v52 = vmul.f32 %v1776_v50, %v1762_v49 }
 0x754   : > { %v1779_v53 = vpack.c.bf16 %v1778_v52, %v1777_v51 }
 0x756   : > { %1856 = vmatmul.bf16.vlgmr.msra.gmra.mxu1 %v1779_v53 }
 0x7d3   : > { %v1857_v55 = vpop.f32.mrf.mxu1 }
 0x7d4   : > { %v1858_v56 = vadd.f32 %v2446_v54, %v1857_v55 }
 0x7d6   : > { %v1862_v57 = vadd.f32 %v1858_v56, %v3179_v36 }
 0x7d8   : > { %1864 = vst.msk [vmem:[#allocation2] sm:$0xff] %vm947_vm1, %v1862_v57 }
 0x7db   : > { %v1859_v58 = vpop.f32.mrf.mxu1 }
 0x7dc   : > { %v1860_v59 = vadd.f32 %v2446_v54, %v1859_v58  ;;  %1869 = sbr.rel (%p2298_p3) target bundleno = 2296 (0x8f8), region = 120 }
 0x7de   : > { %v1863_v60 = vadd.f32 %v1860_v59, %v3184_v40 }
 0x7e0   : > { %1865 = vst.msk [vmem:[#allocation2 + $0x8] sm:$0xff] %vm947_vm1, %v1863_v60 }
 0x7e1   : > { %v1872_v61 = vsel %vm947_vm1, %v1862_v57, 0.0  ;;  %v1875_v62 = vsel %vm947_vm1, %v1863_v60, 0.0  ;;  %v2493_v24 = vld [vmem:[%s3347_s26] ss:$0 sm:$0xff]  ;;  %vm1928_vm8 = vcmask 257024  }
 0x7e2   : > { %1873 = vadd.xlane.f32.xlu0 %v1872_v61  ;;  %v2494_v27 = vld [vmem:[%s3348_s3] ss:$0 sm:$0xff] }
 0x7ea   : > { %1876 = vadd.xlane.f32.xlu0 %v1875_v62 }
 0x855   : > { %v1874_v63 = vpop.xlane.xlu0 %1873 }
 0x856   : > { %v1878_v36 = vmul.f32 %v1874_v63, %v3027_v12 }
 0x858   : > { %v1880_v0 = vsub.f32 %v1862_v57, %v1878_v36 }
 0x85a   : > { %v1882_v1 = vmul.f32 %v1880_v0, %v1880_v0 }
 0x85c   : > { %v1884_v3 = vsel %vm947_vm1, %v1882_v1, 0.0 }
 0x85d   : > { %1885 = vadd.xlane.f32.xlu1 %v1884_v3  ;;  %v1877_v40 = vpop.xlane.xlu0 %1876 }
 0x85e   : > { %v1879_v5 = vmul.f32 %v1877_v40, %v3027_v12 }
 0x860   : > { %v1881_v6 = vsub.f32 %v1863_v60, %v1879_v5 }
 0x862   : > { %v1883_v7 = vmul.f32 %v1881_v6, %v1881_v6 }
 0x864   : > { %v1887_v8 = vsel %vm947_vm1, %v1883_v7, 0.0 }
 0x865   : > { %1888 = vadd.xlane.f32.xlu1 %v1887_v8 }
 0x8d0   : > { %v1886_v9 = vpop.xlane.xlu1 %1885 }
 0x8d1   : > { %v1890_v10 = vmul.f32 %v1886_v9, %v3027_v12 }
 0x8d3   : > { %v1892_v11 = vadd.f32 1e-05, %v1890_v10 }
 0x8d5   : > { %2495 = vrsqrt.f32 %v1892_v11  ;;  %vm1900_vm1 = vweird.f32 %v1892_v11 }
 0x8d8   : > { %v1889_v13 = vpop.xlane.xlu1 %1888 }
 0x8d9   : > { %v1891_v14 = vmul.f32 %v1889_v13, %v3027_v12 }
 0x8db   : > { %v2496_v15 = vpop.eup %2495  ;;  %v1893_v16 = vadd.f32 1e-05, %v1891_v14 }
 0x8dc   : > { %v1895_v17 = vmul.f32 %v2496_v15, %v1892_v11  ;;  %vm1901_vm5 = vweird.f32 %v2496_v15 }
 0x8dd   : > { %2497 = vrsqrt.f32 %v1893_v16  ;;  %vm1902_vm6 = vmor %vm1900_vm1, %vm1901_vm5  ;;  %vm1910_vm9 = vweird.f32 %v1893_v16 }
 0x8de   : > { %v1896_v18 = vmul.f32 %v2496_v15, %v1895_v17 }
 0x8e0   : > { %v1897_v19 = vmul.f32 0.5, %v1896_v18 }
 0x8e2   : > { %v1898_v20 = vsub.f32 1.5, %v1897_v19 }
 0x8e3   : > { %v2498_v21 = vpop.eup %2497 }
 0x8e4   : > { %v1899_v22 = vmul.f32 %v2496_v15, %v1898_v20  ;;  %v1905_v23 = vmul.f32 %v2498_v21, %v1893_v16  ;;  %vm1911_vm7 = vweird.f32 %v2498_v21 }
 0x8e5   : > { %vm1912_vm10 = vmor %vm1910_vm9, %vm1911_vm7 }
 0x8e6   : > { %v1903_v25 = vsel %vm1902_vm6, %v2496_v15, %v1899_v22  ;;  %v1906_v26 = vmul.f32 %v2498_v21, %v1905_v23 }
 0x8e7   : > { %v1914_v12 = vmul.f32 %v1903_v25, %v1880_v0 }
 0x8e8   : > { %v1907_v29 = vmul.f32 0.5, %v1906_v26 }
 0x8e9   : > { %v1919_v30 = vmul.f32 %v2493_v24, %v1914_v12 }
 0x8ea   : > { %v1908_v31 = vsub.f32 1.5, %v1907_v29 }
 0x8eb   : > { %v1924_v33 = vadd.f32 %v2494_v27, %v1919_v30 }
 0x8ec   : > { %v1909_v34 = vmul.f32 %v2498_v21, %v1908_v31 }
 0x8ed   : > { %v1926_v35 = vpack.c.bf16 %v1924_v33, %v1924_v33 }
 0x8ee   : > { %v1913_v37 = vsel %vm1912_vm10, %v2498_v21, %v1909_v34 }
 0x8ef   : > { %1929 = vst.msk [vmem:[#allocation11] sm:$0xf] %vm1928_vm8, %v1926_v35  ;;  %v1915_v38 = vmul.f32 %v1913_v37, %v1881_v6 }
 0x8f1   : > { %v1920_v39 = vmul.f32 %v2493_v24, %v1915_v38 }
 0x8f3   : > { %v1925_v41 = vadd.f32 %v2494_v27, %v1920_v39 }
 0x8f5   : > { %v1927_v42 = vpack.c.bf16 %v1925_v41, %v1925_v41 }
 0x8f7   : > { %1930 = vst.msk [vmem:[#allocation11 + $0x4] sm:$0xf] %vm1928_vm8, %v1927_v42 }
 0x8f8 PF: > { %s3349_s9 = sld [smem:[#allocation22_spill]]  ;;  %s2722_s15 = smov [#allocation11]  }
 0x8f9   : > { %s3350_s19 = sld [smem:[#allocation40_spill]]  ;;  %s1939_s17 = sshll.u32 %s2722_s15, 4  ;;  %s1940_s17 = int_to_ptr.vmem [resolvable:$true] %s1939_s17 }
 0x8fa   : > { %s2723_s23 = smov 64   ;;  %s2724_s14 = smov 4  }
 0x8fe   : > { %p2358_p4 = scmp.eq.s32.totalorder %s3349_s9, 1 }
 0x8ff   : > { %s1941_s29 = sshll.u32 %s3350_s19, 4  ;;  %s1942_s29 = int_to_ptr.hbm [resolvable:$true] %s1941_s29 }
 0x900   : > { %2338 = dma.vmem_to_hbm [thread:$0]  (%p2358_p4), %s1940_s17, 128, %s1942_s29, [#allocation5], %s2723_s23, %s2723_s23, %s2724_s14  }
 0x901   : > { %2684 = dma.done.wait (%p2358_p4), [#allocation5], 128  }
 0x902   : > { %2686 = vsyncadd (%p2358_p4), [#allocation5], 4294967168 }
 0x903 PF: > { %s3351_s24 = sld [smem:[#allocation19_spill]] }
 0x904   : > { %s3352_s0 = sld [smem:[#allocation16_spill]] }
 0x905   : > { %s3353_s30 = sld [smem:[#allocation17_spill]] }
 0x906   : > { %s3354_s20 = sld [smem:[#allocation21_spill]] }
 0x907   : > { %s3355_s21 = sld [smem:[#allocation18_spill]] }
 0x908   : > { %s3356_s1 = sld [smem:[#allocation20_spill]] }
 0x909   : > { %s37_s22 = sadd.s32 1, %s3351_s24  }
 0x90a   : > { %p34_p5 = scmp.ge.s32.totalorder %s37_s22, 4  }
 0x90c   :  { %36 = sbr.rel (!%p34_p5) target bundleno = 26 (0x1a), region = 211 }
 0x911   :  { %1958 = vsyncpa [#allocation4], 1 }
 0x912   :  { %1960 = vsyncpa [#allocation4 + $0x1], 1 }
 0x913   :  { %1961 = vsyncpa [#allocation7], 1 }
 0x914   :  { %1963 = vsyncpa [#allocation7 + $0x1], 1 }
 0x915   :  { %1964 = vsyncpa [#allocation10], 1 }
 0x916   :  { %1966 = vsyncpa [#allocation10 + $0x1], 1 }
 0x917   :  { %1967 = vsyncpa [#allocation5], 1 }
 0x918   :  { %1969 = vsyncpa [#allocation5 + $0x1], 1 }

</bundles_post_ra>
